<compile_context>
chip_gen: v5e
topology: v5e:2x2
jax: 0.10.0
libtpu: 0.0.40
codegen_flags: <defaults>
</compile_context>

<pallas_src>
import math

import numpy as np
import jax
import jax.numpy as jnp
from jax.experimental import pallas as pl
from jax.experimental.pallas import tpu as pltpu

_LOG_2PI = math.log(2.0 * math.pi)


def _round_up(n, m):
    return ((n + m - 1) // m) * m


# ---------------------------------------------------------------------------
# Kernel: one batch tile of the whole flow (all couplings + prior log-prob).
# Everything is feature-major: (features, batch_tile).
# ---------------------------------------------------------------------------
def _flow_kernel(x1_ref, x2_ref,
                 w1_ref, b1_ref, wh_ref, bh_ref,
                 wol_ref, bol_ref, wot_ref, bot_ref,
                 za_ref, zb_ref, logp_ref):
    x1 = x1_ref[...].astype(jnp.float32)          # (half, TB)  conditioning half
    x2 = x2_ref[...].astype(jnp.float32)          # (half, TB)  transformed half
    half = x1.shape[0]
    D = 2 * half
    T = w1_ref.shape[0]                           # num_transform (static)
    L = wh_ref.shape[1]                           # hidden_layers - 1 (static)

    # Elementwise logdet accumulator; one cross-lane/sublane reduce at the very end.
    logs_acc = jnp.zeros_like(x1)                 # (half, TB) f32

    for t in range(T):                            # tiny T -> keep static unroll
        # MLP(x1): bf16 operands into the MXU, f32 accumulation.
        h = jnp.dot(w1_ref[t], x1.astype(jnp.bfloat16),
                    preferred_element_type=jnp.float32) + b1_ref[t]   # (F, TB)
        h = jnp.maximum(h, 0.0)
        for l in range(L):
            h = jnp.dot(wh_ref[t, l], h.astype(jnp.bfloat16),
                        preferred_element_type=jnp.float32) + bh_ref[t, l]
            h = jnp.maximum(h, 0.0)
        hb = h.astype(jnp.bfloat16)
        logs = jnp.dot(wol_ref[t], hb,
                       preferred_element_type=jnp.float32) + bol_ref[t]  # (half, TB)
        tsh = jnp.dot(wot_ref[t], hb,
                      preferred_element_type=jnp.float32) + bot_ref[t]   # (half, TB)

        # Affine transform in f32 (VPU + EUP).
        z2 = x2 * jnp.exp(logs) + tsh
        logs_acc = logs_acc + logs
        # z = cat([z2, x1]) realized purely by swapping roles (no lane concat).
        x1, x2 = z2, x1

    # Final z halves: first half = last z2 (== x1), second half = previous x1 (== x2).
    za_ref[...] = x1
    zb_ref[...] = x2

    # log_prob = sum(logs over all couplings) + sum_d(-0.5 z_d^2 - 0.5 log 2pi)
    # Single fused cross-sublane reduction, lane-dense (1, TB) output.
    elem = logs_acc - 0.5 * (x1 * x1 + x2 * x2)                  # (half, TB)
    logp_ref[...] = (jnp.sum(elem, axis=0, keepdims=True)
                     - 0.5 * D * _LOG_2PI)


# ---------------------------------------------------------------------------
# Wrapper: layout plumbing (split halves, feature-major transpose, batch grid).
# ---------------------------------------------------------------------------
def flow_distribution_1d(x, params, *, batch_tile=256):
    """FlowDistribution1D.forward: returns (z, log_prob), z:(B,D), log_prob:(B,)."""
    w1, b1, wh, bh, wol, bol, wot, bot = params
    B, D = x.shape
    half = D // 2
    T, F = w1.shape[0], w1.shape[1]
    L = wh.shape[1]

    # Batch tile: multiple of 128 lanes; pad batch up to a multiple of the tile.
    tb = _round_up(min(batch_tile, B), 128)
    Bp = _round_up(B, tb)
    grid = (Bp // tb,)

    # Feature-major, pre-split halves: (half, Bp). (Wrapper-side transpose is cheap
    # layout plumbing; it buys lane-dense compute and unmasked stores in the kernel.)
    xt = x.astype(jnp.float32).T                                  # (D, B)
    if Bp != B:
        xt = jnp.pad(xt, ((0, 0), (0, Bp - B)))
    x1, x2 = xt[:half], xt[half:]

    batch_spec = pl.BlockSpec((half, tb), lambda i: (0, i))

    def resident(arr):  # whole array kept VMEM-resident across all grid steps
        n = arr.ndim
        return pl.BlockSpec(arr.shape, lambda i: (0,) * n)

    # Advisory cost estimate for the XLA scheduler.
    mm_flops = 2 * Bp * T * (half * F + L * F * F + 2 * half * F)
    ew_flops = Bp * (T * 6 * half + 4 * D)
    bytes_accessed = (4 * (2 * half * Bp) * 2 + 4 * Bp
                      + 2 * (w1.size + wh.size + wol.size + wot.size)
                      + 4 * (b1.size + bh.size + bol.size + bot.size))
    cost = pl.CostEstimate(flops=int(mm_flops + ew_flops),
                           transcendentals=int(Bp * T * half),
                           bytes_accessed=int(bytes_accessed))

    za, zb, logp = pl.pallas_call(
        _flow_kernel,
        out_shape=(jax.ShapeDtypeStruct((half, Bp), jnp.float32),
                   jax.ShapeDtypeStruct((half, Bp), jnp.float32),
                   jax.ShapeDtypeStruct((1, Bp), jnp.float32)),
        grid_spec=pltpu.PrefetchScalarGridSpec(
            num_scalar_prefetch=0,
            grid=grid,
            in_specs=[batch_spec, batch_spec,
                      resident(w1), resident(b1),
                      resident(wh), resident(bh),
                      resident(wol), resident(bol),
                      resident(wot), resident(bot)],
            out_specs=(pl.BlockSpec((half, tb), lambda i: (0, i)),
                       pl.BlockSpec((half, tb), lambda i: (0, i)),
                       pl.BlockSpec((1, tb), lambda i: (0, i))),
        ),
        compiler_params=pltpu.CompilerParams(
            dimension_semantics=("parallel",)),
        cost_estimate=cost,
    )(x1, x2, w1, b1, wh, bh, wol, bol, wot, bot)

    z = jnp.concatenate([za[:, :B], zb[:, :B]], axis=0).T         # (B, D)
    return z, logp[0, :B]


# ---------------------------------------------------------------------------
# Deterministic parameter construction (synthetic init, not a checkpoint load).
# Weights are stored (out_features, in_features) (torch Linear orientation) in bf16;
# biases are f32 with a trailing singleton lane dim for cheap lane-broadcast.
# ---------------------------------------------------------------------------
def init_params(key, dim, num_transform, features, hidden_layers, scale=0.2):
    half = dim // 2
    L = hidden_layers - 1
    k = jax.random.split(key, 8)
    w1 = (scale * jax.random.normal(k[0], (num_transform, features, half))).astype(jnp.bfloat16)
    wh = (scale * jax.random.normal(k[1], (num_transform, L, features, features))).astype(jnp.bfloat16)
    wol = (scale * jax.random.normal(k[2], (num_transform, half, features))).astype(jnp.bfloat16)
    wot = (scale * jax.random.normal(k[3], (num_transform, half, features))).astype(jnp.bfloat16)
    b1 = 0.1 * jax.random.normal(k[4], (num_transform, features, 1), jnp.float32)
    bh = 0.1 * jax.random.normal(k[5], (num_transform, L, features, 1), jnp.float32)
    bol = 0.1 * jax.random.normal(k[6], (num_transform, half, 1), jnp.float32)
    bot = 0.1 * jax.random.normal(k[7], (num_transform, half, 1), jnp.float32)
    return (w1, b1, wh, bh, wol, bol, wot, bot)


# Pure-JAX reference (identical math, same bf16 matmul operands / f32 accumulation).
def reference(x, params):
    w1, b1, wh, bh, wol, bol, wot, bot = params
    B, D = x.shape
    half = D // 2
    T, L = w1.shape[0], wh.shape[1]
    x1 = x.astype(jnp.float32)[:, :half].T
    x2 = x.astype(jnp.float32)[:, half:].T
    logs_acc = jnp.zeros_like(x1)
    for t in range(T):
        h = jnp.maximum(jnp.dot(w1[t], x1.astype(jnp.bfloat16),
                                preferred_element_type=jnp.float32) + b1[t], 0.0)
        for l in range(L):
            h = jnp.maximum(jnp.dot(wh[t, l], h.astype(jnp.bfloat16),
                                    preferred_element_type=jnp.float32) + bh[t, l], 0.0)
        hb = h.astype(jnp.bfloat16)
        logs = jnp.dot(wol[t], hb, preferred_element_type=jnp.float32) + bol[t]
        tsh = jnp.dot(wot[t], hb, preferred_element_type=jnp.float32) + bot[t]
        z2 = x2 * jnp.exp(logs) + tsh
        logs_acc = logs_acc + logs
        x1, x2 = z2, x1
    z = jnp.concatenate([x1, x2], axis=0).T
    logp = jnp.sum(logs_acc - 0.5 * (x1 * x1 + x2 * x2), axis=0) - 0.5 * D * _LOG_2PI
    return z, logp


if __name__ == "__main__":
    # dim=16, num_transform=4, features=32, hidden_layers=3.
    # Batch 512 (two 256-wide lane-dense tiles) so the batch grid / pipelining is real;
    # total data is still only tens of KiB.
    B, DIM, T, F, HL = 512, 16, 4, 32, 3

    key = jax.random.PRNGKey(0)
    kx, kp = jax.random.split(key)
    x = jax.random.normal(kx, (B, DIM), jnp.float32)
    params = init_params(kp, DIM, T, F, HL)

    z, logp = flow_distribution_1d(x, params, batch_tile=256)
    z = jax.block_until_ready(z)
    logp = jax.block_until_ready(logp)

    z_ref, logp_ref = reference(x, params)
    np.testing.assert_allclose(np.asarray(z), np.asarray(z_ref), rtol=2e-3, atol=2e-3)
    np.testing.assert_allclose(np.asarray(logp), np.asarray(logp_ref), rtol=2e-3, atol=2e-3)

    print("KERNEL_OK")
</pallas_src>

<mosaic_0001>
module attributes {stable_mosaic.version = 11 : i64} {
  func.func @_flow_kernel(%arg0: i32, %arg1: memref<8x256xf32, #tpu.memory_space<vmem>>, %arg2: memref<8x256xf32, #tpu.memory_space<vmem>>, %arg3: memref<4x32x8xbf16, #tpu.memory_space<vmem>>, %arg4: memref<4x32x1xf32, #tpu.memory_space<vmem>>, %arg5: memref<4x2x32x32xbf16, #tpu.memory_space<vmem>>, %arg6: memref<4x2x32x1xf32, #tpu.memory_space<vmem>>, %arg7: memref<4x8x32xbf16, #tpu.memory_space<vmem>>, %arg8: memref<4x8x1xf32, #tpu.memory_space<vmem>>, %arg9: memref<4x8x32xbf16, #tpu.memory_space<vmem>>, %arg10: memref<4x8x1xf32, #tpu.memory_space<vmem>>, %arg11: memref<8x256xf32, #tpu.memory_space<vmem>>, %arg12: memref<8x256xf32, #tpu.memory_space<vmem>>, %arg13: memref<1x256xf32, #tpu.memory_space<vmem>>) attributes {dimension_semantics = [#tpu.dimension_semantics<parallel>], iteration_bounds = array<i64: 2>, scalar_prefetch = 0 : i64, scratch_operands = 0 : i64, tpu.core_type = #tpu.core_type<tc>, window_params = [{transform_indices = @transform_0, window_bounds = array<i64: 8, 256>}, {transform_indices = @transform_1, window_bounds = array<i64: 8, 256>}, {pipeline_mode = #tpu.pipeline_mode<synchronous>, transform_indices = @transform_2, window_bounds = array<i64: 4, 32, 8>}, {pipeline_mode = #tpu.pipeline_mode<synchronous>, transform_indices = @transform_3, window_bounds = array<i64: 4, 32, 1>}, {pipeline_mode = #tpu.pipeline_mode<synchronous>, transform_indices = @transform_4, window_bounds = array<i64: 4, 2, 32, 32>}, {pipeline_mode = #tpu.pipeline_mode<synchronous>, transform_indices = @transform_5, window_bounds = array<i64: 4, 2, 32, 1>}, {pipeline_mode = #tpu.pipeline_mode<synchronous>, transform_indices = @transform_6, window_bounds = array<i64: 4, 8, 32>}, {pipeline_mode = #tpu.pipeline_mode<synchronous>, transform_indices = @transform_7, window_bounds = array<i64: 4, 8, 1>}, {pipeline_mode = #tpu.pipeline_mode<synchronous>, transform_indices = @transform_8, window_bounds = array<i64: 4, 8, 32>}, {pipeline_mode = #tpu.pipeline_mode<synchronous>, transform_indices = @transform_9, window_bounds = array<i64: 4, 8, 1>}, {transform_indices = @transform_10, window_bounds = array<i64: 8, 256>}, {transform_indices = @transform_11, window_bounds = array<i64: 8, 256>}, {transform_indices = @transform_12, window_bounds = array<i64: 1, 256>}]} {
    %c0 = arith.constant 0 : index
    %c0_0 = arith.constant 0 : index
    %0 = vector.load %arg1[%c0, %c0_0] : memref<8x256xf32, #tpu.memory_space<vmem>>, vector<8x256xf32>
    %c0_1 = arith.constant 0 : index
    %c0_2 = arith.constant 0 : index
    %1 = vector.load %arg2[%c0_1, %c0_2] : memref<8x256xf32, #tpu.memory_space<vmem>>, vector<8x256xf32>
    %cst = arith.constant 0.000000e+00 : f32
    %2 = vector.broadcast %cst : f32 to vector<8x256xf32>
    %c0_3 = arith.constant 0 : index
    %c0_4 = arith.constant 0 : index
    %c0_5 = arith.constant 0 : index
    %3 = vector.load %arg3[%c0_3, %c0_4, %c0_5] : memref<4x32x8xbf16, #tpu.memory_space<vmem>>, vector<1x32x8xbf16>
    %4 = vector.shape_cast %3 : vector<1x32x8xbf16> to vector<32x8xbf16>
    %5 = arith.truncf %0 : vector<8x256xf32> to vector<8x256xbf16>
    %cst_6 = arith.constant dense<0.000000e+00> : vector<32x256xf32>
    %6 = tpu.matmul %4, %5, %cst_6 {dimension_numbers = #tpu.dot_dimension_numbers<[1], [0], [0], [1], [0, 0, 1, 1], [], []>} : vector<32x8xbf16>, vector<8x256xbf16>, vector<32x256xf32> -> vector<32x256xf32>
    %c0_7 = arith.constant 0 : index
    %c0_8 = arith.constant 0 : index
    %c0_9 = arith.constant 0 : index
    %7 = vector.load %arg4[%c0_7, %c0_8, %c0_9] : memref<4x32x1xf32, #tpu.memory_space<vmem>>, vector<1x32x1xf32>
    %8 = vector.shape_cast %7 : vector<1x32x1xf32> to vector<32x1xf32>
    %9 = vector.broadcast %8 : vector<32x1xf32> to vector<32x256xf32>
    %10 = arith.addf %6, %9 : vector<32x256xf32>
    %cst_10 = arith.constant 0.000000e+00 : f32
    %11 = vector.broadcast %cst_10 : f32 to vector<32x256xf32>
    %12 = arith.maximumf %10, %11 : vector<32x256xf32>
    %c0_11 = arith.constant 0 : index
    %c0_12 = arith.constant 0 : index
    %c0_13 = arith.constant 0 : index
    %c0_14 = arith.constant 0 : index
    %13 = vector.load %arg5[%c0_11, %c0_12, %c0_13, %c0_14] : memref<4x2x32x32xbf16, #tpu.memory_space<vmem>>, vector<1x1x32x32xbf16>
    %14 = vector.shape_cast %13 : vector<1x1x32x32xbf16> to vector<32x32xbf16>
    %15 = arith.truncf %12 : vector<32x256xf32> to vector<32x256xbf16>
    %cst_15 = arith.constant dense<0.000000e+00> : vector<32x256xf32>
    %16 = tpu.matmul %14, %15, %cst_15 {dimension_numbers = #tpu.dot_dimension_numbers<[1], [0], [0], [1], [0, 0, 1, 1], [], []>} : vector<32x32xbf16>, vector<32x256xbf16>, vector<32x256xf32> -> vector<32x256xf32>
    %c0_16 = arith.constant 0 : index
    %c0_17 = arith.constant 0 : index
    %c0_18 = arith.constant 0 : index
    %c0_19 = arith.constant 0 : index
    %17 = vector.load %arg6[%c0_16, %c0_17, %c0_18, %c0_19] : memref<4x2x32x1xf32, #tpu.memory_space<vmem>>, vector<1x1x32x1xf32>
    %18 = vector.shape_cast %17 : vector<1x1x32x1xf32> to vector<32x1xf32>
    %19 = vector.broadcast %18 : vector<32x1xf32> to vector<32x256xf32>
    %20 = arith.addf %16, %19 : vector<32x256xf32>
    %cst_20 = arith.constant 0.000000e+00 : f32
    %21 = vector.broadcast %cst_20 : f32 to vector<32x256xf32>
    %22 = arith.maximumf %20, %21 : vector<32x256xf32>
    %c0_21 = arith.constant 0 : index
    %c1 = arith.constant 1 : index
    %c0_22 = arith.constant 0 : index
    %c0_23 = arith.constant 0 : index
    %23 = vector.load %arg5[%c0_21, %c1, %c0_22, %c0_23] : memref<4x2x32x32xbf16, #tpu.memory_space<vmem>>, vector<1x1x32x32xbf16>
    %24 = vector.shape_cast %23 : vector<1x1x32x32xbf16> to vector<32x32xbf16>
    %25 = arith.truncf %22 : vector<32x256xf32> to vector<32x256xbf16>
    %cst_24 = arith.constant dense<0.000000e+00> : vector<32x256xf32>
    %26 = tpu.matmul %24, %25, %cst_24 {dimension_numbers = #tpu.dot_dimension_numbers<[1], [0], [0], [1], [0, 0, 1, 1], [], []>} : vector<32x32xbf16>, vector<32x256xbf16>, vector<32x256xf32> -> vector<32x256xf32>
    %c0_25 = arith.constant 0 : index
    %c1_26 = arith.constant 1 : index
    %c0_27 = arith.constant 0 : index
    %c0_28 = arith.constant 0 : index
    %27 = vector.load %arg6[%c0_25, %c1_26, %c0_27, %c0_28] : memref<4x2x32x1xf32, #tpu.memory_space<vmem>>, vector<1x1x32x1xf32>
    %28 = vector.shape_cast %27 : vector<1x1x32x1xf32> to vector<32x1xf32>
    %29 = vector.broadcast %28 : vector<32x1xf32> to vector<32x256xf32>
    %30 = arith.addf %26, %29 : vector<32x256xf32>
    %cst_29 = arith.constant 0.000000e+00 : f32
    %31 = vector.broadcast %cst_29 : f32 to vector<32x256xf32>
    %32 = arith.maximumf %30, %31 : vector<32x256xf32>
    %33 = arith.truncf %32 : vector<32x256xf32> to vector<32x256xbf16>
    %c0_30 = arith.constant 0 : index
    %c0_31 = arith.constant 0 : index
    %c0_32 = arith.constant 0 : index
    %34 = vector.load %arg7[%c0_30, %c0_31, %c0_32] : memref<4x8x32xbf16, #tpu.memory_space<vmem>>, vector<1x8x32xbf16>
    %35 = vector.shape_cast %34 : vector<1x8x32xbf16> to vector<8x32xbf16>
    %cst_33 = arith.constant dense<0.000000e+00> : vector<8x256xf32>
    %36 = tpu.matmul %35, %33, %cst_33 {dimension_numbers = #tpu.dot_dimension_numbers<[1], [0], [0], [1], [0, 0, 1, 1], [], []>} : vector<8x32xbf16>, vector<32x256xbf16>, vector<8x256xf32> -> vector<8x256xf32>
    %c0_34 = arith.constant 0 : index
    %c0_35 = arith.constant 0 : index
    %c0_36 = arith.constant 0 : index
    %37 = vector.load %arg8[%c0_34, %c0_35, %c0_36] : memref<4x8x1xf32, #tpu.memory_space<vmem>>, vector<1x8x1xf32>
    %38 = vector.shape_cast %37 : vector<1x8x1xf32> to vector<8x1xf32>
    %39 = vector.broadcast %38 : vector<8x1xf32> to vector<8x256xf32>
    %40 = arith.addf %36, %39 : vector<8x256xf32>
    %c0_37 = arith.constant 0 : index
    %c0_38 = arith.constant 0 : index
    %c0_39 = arith.constant 0 : index
    %41 = vector.load %arg9[%c0_37, %c0_38, %c0_39] : memref<4x8x32xbf16, #tpu.memory_space<vmem>>, vector<1x8x32xbf16>
    %42 = vector.shape_cast %41 : vector<1x8x32xbf16> to vector<8x32xbf16>
    %cst_40 = arith.constant dense<0.000000e+00> : vector<8x256xf32>
    %43 = tpu.matmul %42, %33, %cst_40 {dimension_numbers = #tpu.dot_dimension_numbers<[1], [0], [0], [1], [0, 0, 1, 1], [], []>} : vector<8x32xbf16>, vector<32x256xbf16>, vector<8x256xf32> -> vector<8x256xf32>
    %c0_41 = arith.constant 0 : index
    %c0_42 = arith.constant 0 : index
    %c0_43 = arith.constant 0 : index
    %44 = vector.load %arg10[%c0_41, %c0_42, %c0_43] : memref<4x8x1xf32, #tpu.memory_space<vmem>>, vector<1x8x1xf32>
    %45 = vector.shape_cast %44 : vector<1x8x1xf32> to vector<8x1xf32>
    %46 = vector.broadcast %45 : vector<8x1xf32> to vector<8x256xf32>
    %47 = arith.addf %43, %46 : vector<8x256xf32>
    %48 = math.exp %40 : vector<8x256xf32>
    %49 = arith.mulf %1, %48 : vector<8x256xf32>
    %50 = arith.addf %49, %47 : vector<8x256xf32>
    %51 = arith.addf %2, %40 : vector<8x256xf32>
    %c1_44 = arith.constant 1 : index
    %c0_45 = arith.constant 0 : index
    %c0_46 = arith.constant 0 : index
    %52 = vector.load %arg3[%c1_44, %c0_45, %c0_46] : memref<4x32x8xbf16, #tpu.memory_space<vmem>>, vector<1x32x8xbf16>
    %53 = vector.shape_cast %52 : vector<1x32x8xbf16> to vector<32x8xbf16>
    %54 = arith.truncf %50 : vector<8x256xf32> to vector<8x256xbf16>
    %cst_47 = arith.constant dense<0.000000e+00> : vector<32x256xf32>
    %55 = tpu.matmul %53, %54, %cst_47 {dimension_numbers = #tpu.dot_dimension_numbers<[1], [0], [0], [1], [0, 0, 1, 1], [], []>} : vector<32x8xbf16>, vector<8x256xbf16>, vector<32x256xf32> -> vector<32x256xf32>
    %c1_48 = arith.constant 1 : index
    %c0_49 = arith.constant 0 : index
    %c0_50 = arith.constant 0 : index
    %56 = vector.load %arg4[%c1_48, %c0_49, %c0_50] : memref<4x32x1xf32, #tpu.memory_space<vmem>>, vector<1x32x1xf32>
    %57 = vector.shape_cast %56 : vector<1x32x1xf32> to vector<32x1xf32>
    %58 = vector.broadcast %57 : vector<32x1xf32> to vector<32x256xf32>
    %59 = arith.addf %55, %58 : vector<32x256xf32>
    %cst_51 = arith.constant 0.000000e+00 : f32
    %60 = vector.broadcast %cst_51 : f32 to vector<32x256xf32>
    %61 = arith.maximumf %59, %60 : vector<32x256xf32>
    %c1_52 = arith.constant 1 : index
    %c0_53 = arith.constant 0 : index
    %c0_54 = arith.constant 0 : index
    %c0_55 = arith.constant 0 : index
    %62 = vector.load %arg5[%c1_52, %c0_53, %c0_54, %c0_55] : memref<4x2x32x32xbf16, #tpu.memory_space<vmem>>, vector<1x1x32x32xbf16>
    %63 = vector.shape_cast %62 : vector<1x1x32x32xbf16> to vector<32x32xbf16>
    %64 = arith.truncf %61 : vector<32x256xf32> to vector<32x256xbf16>
    %cst_56 = arith.constant dense<0.000000e+00> : vector<32x256xf32>
    %65 = tpu.matmul %63, %64, %cst_56 {dimension_numbers = #tpu.dot_dimension_numbers<[1], [0], [0], [1], [0, 0, 1, 1], [], []>} : vector<32x32xbf16>, vector<32x256xbf16>, vector<32x256xf32> -> vector<32x256xf32>
    %c1_57 = arith.constant 1 : index
    %c0_58 = arith.constant 0 : index
    %c0_59 = arith.constant 0 : index
    %c0_60 = arith.constant 0 : index
    %66 = vector.load %arg6[%c1_57, %c0_58, %c0_59, %c0_60] : memref<4x2x32x1xf32, #tpu.memory_space<vmem>>, vector<1x1x32x1xf32>
    %67 = vector.shape_cast %66 : vector<1x1x32x1xf32> to vector<32x1xf32>
    %68 = vector.broadcast %67 : vector<32x1xf32> to vector<32x256xf32>
    %69 = arith.addf %65, %68 : vector<32x256xf32>
    %cst_61 = arith.constant 0.000000e+00 : f32
    %70 = vector.broadcast %cst_61 : f32 to vector<32x256xf32>
    %71 = arith.maximumf %69, %70 : vector<32x256xf32>
    %c1_62 = arith.constant 1 : index
    %c1_63 = arith.constant 1 : index
    %c0_64 = arith.constant 0 : index
    %c0_65 = arith.constant 0 : index
    %72 = vector.load %arg5[%c1_62, %c1_63, %c0_64, %c0_65] : memref<4x2x32x32xbf16, #tpu.memory_space<vmem>>, vector<1x1x32x32xbf16>
    %73 = vector.shape_cast %72 : vector<1x1x32x32xbf16> to vector<32x32xbf16>
    %74 = arith.truncf %71 : vector<32x256xf32> to vector<32x256xbf16>
    %cst_66 = arith.constant dense<0.000000e+00> : vector<32x256xf32>
    %75 = tpu.matmul %73, %74, %cst_66 {dimension_numbers = #tpu.dot_dimension_numbers<[1], [0], [0], [1], [0, 0, 1, 1], [], []>} : vector<32x32xbf16>, vector<32x256xbf16>, vector<32x256xf32> -> vector<32x256xf32>
    %c1_67 = arith.constant 1 : index
    %c1_68 = arith.constant 1 : index
    %c0_69 = arith.constant 0 : index
    %c0_70 = arith.constant 0 : index
    %76 = vector.load %arg6[%c1_67, %c1_68, %c0_69, %c0_70] : memref<4x2x32x1xf32, #tpu.memory_space<vmem>>, vector<1x1x32x1xf32>
    %77 = vector.shape_cast %76 : vector<1x1x32x1xf32> to vector<32x1xf32>
    %78 = vector.broadcast %77 : vector<32x1xf32> to vector<32x256xf32>
    %79 = arith.addf %75, %78 : vector<32x256xf32>
    %cst_71 = arith.constant 0.000000e+00 : f32
    %80 = vector.broadcast %cst_71 : f32 to vector<32x256xf32>
    %81 = arith.maximumf %79, %80 : vector<32x256xf32>
    %82 = arith.truncf %81 : vector<32x256xf32> to vector<32x256xbf16>
    %c1_72 = arith.constant 1 : index
    %c0_73 = arith.constant 0 : index
    %c0_74 = arith.constant 0 : index
    %83 = vector.load %arg7[%c1_72, %c0_73, %c0_74] : memref<4x8x32xbf16, #tpu.memory_space<vmem>>, vector<1x8x32xbf16>
    %84 = vector.shape_cast %83 : vector<1x8x32xbf16> to vector<8x32xbf16>
    %cst_75 = arith.constant dense<0.000000e+00> : vector<8x256xf32>
    %85 = tpu.matmul %84, %82, %cst_75 {dimension_numbers = #tpu.dot_dimension_numbers<[1], [0], [0], [1], [0, 0, 1, 1], [], []>} : vector<8x32xbf16>, vector<32x256xbf16>, vector<8x256xf32> -> vector<8x256xf32>
    %c1_76 = arith.constant 1 : index
    %c0_77 = arith.constant 0 : index
    %c0_78 = arith.constant 0 : index
    %86 = vector.load %arg8[%c1_76, %c0_77, %c0_78] : memref<4x8x1xf32, #tpu.memory_space<vmem>>, vector<1x8x1xf32>
    %87 = vector.shape_cast %86 : vector<1x8x1xf32> to vector<8x1xf32>
    %88 = vector.broadcast %87 : vector<8x1xf32> to vector<8x256xf32>
    %89 = arith.addf %85, %88 : vector<8x256xf32>
    %c1_79 = arith.constant 1 : index
    %c0_80 = arith.constant 0 : index
    %c0_81 = arith.constant 0 : index
    %90 = vector.load %arg9[%c1_79, %c0_80, %c0_81] : memref<4x8x32xbf16, #tpu.memory_space<vmem>>, vector<1x8x32xbf16>
    %91 = vector.shape_cast %90 : vector<1x8x32xbf16> to vector<8x32xbf16>
    %cst_82 = arith.constant dense<0.000000e+00> : vector<8x256xf32>
    %92 = tpu.matmul %91, %82, %cst_82 {dimension_numbers = #tpu.dot_dimension_numbers<[1], [0], [0], [1], [0, 0, 1, 1], [], []>} : vector<8x32xbf16>, vector<32x256xbf16>, vector<8x256xf32> -> vector<8x256xf32>
    %c1_83 = arith.constant 1 : index
    %c0_84 = arith.constant 0 : index
    %c0_85 = arith.constant 0 : index
    %93 = vector.load %arg10[%c1_83, %c0_84, %c0_85] : memref<4x8x1xf32, #tpu.memory_space<vmem>>, vector<1x8x1xf32>
    %94 = vector.shape_cast %93 : vector<1x8x1xf32> to vector<8x1xf32>
    %95 = vector.broadcast %94 : vector<8x1xf32> to vector<8x256xf32>
    %96 = arith.addf %92, %95 : vector<8x256xf32>
    %97 = math.exp %89 : vector<8x256xf32>
    %98 = arith.mulf %0, %97 : vector<8x256xf32>
    %99 = arith.addf %98, %96 : vector<8x256xf32>
    %100 = arith.addf %51, %89 : vector<8x256xf32>
    %c2 = arith.constant 2 : index
    %c0_86 = arith.constant 0 : index
    %c0_87 = arith.constant 0 : index
    %101 = vector.load %arg3[%c2, %c0_86, %c0_87] : memref<4x32x8xbf16, #tpu.memory_space<vmem>>, vector<1x32x8xbf16>
    %102 = vector.shape_cast %101 : vector<1x32x8xbf16> to vector<32x8xbf16>
    %103 = arith.truncf %99 : vector<8x256xf32> to vector<8x256xbf16>
    %cst_88 = arith.constant dense<0.000000e+00> : vector<32x256xf32>
    %104 = tpu.matmul %102, %103, %cst_88 {dimension_numbers = #tpu.dot_dimension_numbers<[1], [0], [0], [1], [0, 0, 1, 1], [], []>} : vector<32x8xbf16>, vector<8x256xbf16>, vector<32x256xf32> -> vector<32x256xf32>
    %c2_89 = arith.constant 2 : index
    %c0_90 = arith.constant 0 : index
    %c0_91 = arith.constant 0 : index
    %105 = vector.load %arg4[%c2_89, %c0_90, %c0_91] : memref<4x32x1xf32, #tpu.memory_space<vmem>>, vector<1x32x1xf32>
    %106 = vector.shape_cast %105 : vector<1x32x1xf32> to vector<32x1xf32>
    %107 = vector.broadcast %106 : vector<32x1xf32> to vector<32x256xf32>
    %108 = arith.addf %104, %107 : vector<32x256xf32>
    %cst_92 = arith.constant 0.000000e+00 : f32
    %109 = vector.broadcast %cst_92 : f32 to vector<32x256xf32>
    %110 = arith.maximumf %108, %109 : vector<32x256xf32>
    %c2_93 = arith.constant 2 : index
    %c0_94 = arith.constant 0 : index
    %c0_95 = arith.constant 0 : index
    %c0_96 = arith.constant 0 : index
    %111 = vector.load %arg5[%c2_93, %c0_94, %c0_95, %c0_96] : memref<4x2x32x32xbf16, #tpu.memory_space<vmem>>, vector<1x1x32x32xbf16>
    %112 = vector.shape_cast %111 : vector<1x1x32x32xbf16> to vector<32x32xbf16>
    %113 = arith.truncf %110 : vector<32x256xf32> to vector<32x256xbf16>
    %cst_97 = arith.constant dense<0.000000e+00> : vector<32x256xf32>
    %114 = tpu.matmul %112, %113, %cst_97 {dimension_numbers = #tpu.dot_dimension_numbers<[1], [0], [0], [1], [0, 0, 1, 1], [], []>} : vector<32x32xbf16>, vector<32x256xbf16>, vector<32x256xf32> -> vector<32x256xf32>
    %c2_98 = arith.constant 2 : index
    %c0_99 = arith.constant 0 : index
    %c0_100 = arith.constant 0 : index
    %c0_101 = arith.constant 0 : index
    %115 = vector.load %arg6[%c2_98, %c0_99, %c0_100, %c0_101] : memref<4x2x32x1xf32, #tpu.memory_space<vmem>>, vector<1x1x32x1xf32>
    %116 = vector.shape_cast %115 : vector<1x1x32x1xf32> to vector<32x1xf32>
    %117 = vector.broadcast %116 : vector<32x1xf32> to vector<32x256xf32>
    %118 = arith.addf %114, %117 : vector<32x256xf32>
    %cst_102 = arith.constant 0.000000e+00 : f32
    %119 = vector.broadcast %cst_102 : f32 to vector<32x256xf32>
    %120 = arith.maximumf %118, %119 : vector<32x256xf32>
    %c2_103 = arith.constant 2 : index
    %c1_104 = arith.constant 1 : index
    %c0_105 = arith.constant 0 : index
    %c0_106 = arith.constant 0 : index
    %121 = vector.load %arg5[%c2_103, %c1_104, %c0_105, %c0_106] : memref<4x2x32x32xbf16, #tpu.memory_space<vmem>>, vector<1x1x32x32xbf16>
    %122 = vector.shape_cast %121 : vector<1x1x32x32xbf16> to vector<32x32xbf16>
    %123 = arith.truncf %120 : vector<32x256xf32> to vector<32x256xbf16>
    %cst_107 = arith.constant dense<0.000000e+00> : vector<32x256xf32>
    %124 = tpu.matmul %122, %123, %cst_107 {dimension_numbers = #tpu.dot_dimension_numbers<[1], [0], [0], [1], [0, 0, 1, 1], [], []>} : vector<32x32xbf16>, vector<32x256xbf16>, vector<32x256xf32> -> vector<32x256xf32>
    %c2_108 = arith.constant 2 : index
    %c1_109 = arith.constant 1 : index
    %c0_110 = arith.constant 0 : index
    %c0_111 = arith.constant 0 : index
    %125 = vector.load %arg6[%c2_108, %c1_109, %c0_110, %c0_111] : memref<4x2x32x1xf32, #tpu.memory_space<vmem>>, vector<1x1x32x1xf32>
    %126 = vector.shape_cast %125 : vector<1x1x32x1xf32> to vector<32x1xf32>
    %127 = vector.broadcast %126 : vector<32x1xf32> to vector<32x256xf32>
    %128 = arith.addf %124, %127 : vector<32x256xf32>
    %cst_112 = arith.constant 0.000000e+00 : f32
    %129 = vector.broadcast %cst_112 : f32 to vector<32x256xf32>
    %130 = arith.maximumf %128, %129 : vector<32x256xf32>
    %131 = arith.truncf %130 : vector<32x256xf32> to vector<32x256xbf16>
    %c2_113 = arith.constant 2 : index
    %c0_114 = arith.constant 0 : index
    %c0_115 = arith.constant 0 : index
    %132 = vector.load %arg7[%c2_113, %c0_114, %c0_115] : memref<4x8x32xbf16, #tpu.memory_space<vmem>>, vector<1x8x32xbf16>
    %133 = vector.shape_cast %132 : vector<1x8x32xbf16> to vector<8x32xbf16>
    %cst_116 = arith.constant dense<0.000000e+00> : vector<8x256xf32>
    %134 = tpu.matmul %133, %131, %cst_116 {dimension_numbers = #tpu.dot_dimension_numbers<[1], [0], [0], [1], [0, 0, 1, 1], [], []>} : vector<8x32xbf16>, vector<32x256xbf16>, vector<8x256xf32> -> vector<8x256xf32>
    %c2_117 = arith.constant 2 : index
    %c0_118 = arith.constant 0 : index
    %c0_119 = arith.constant 0 : index
    %135 = vector.load %arg8[%c2_117, %c0_118, %c0_119] : memref<4x8x1xf32, #tpu.memory_space<vmem>>, vector<1x8x1xf32>
    %136 = vector.shape_cast %135 : vector<1x8x1xf32> to vector<8x1xf32>
    %137 = vector.broadcast %136 : vector<8x1xf32> to vector<8x256xf32>
    %138 = arith.addf %134, %137 : vector<8x256xf32>
    %c2_120 = arith.constant 2 : index
    %c0_121 = arith.constant 0 : index
    %c0_122 = arith.constant 0 : index
    %139 = vector.load %arg9[%c2_120, %c0_121, %c0_122] : memref<4x8x32xbf16, #tpu.memory_space<vmem>>, vector<1x8x32xbf16>
    %140 = vector.shape_cast %139 : vector<1x8x32xbf16> to vector<8x32xbf16>
    %cst_123 = arith.constant dense<0.000000e+00> : vector<8x256xf32>
    %141 = tpu.matmul %140, %131, %cst_123 {dimension_numbers = #tpu.dot_dimension_numbers<[1], [0], [0], [1], [0, 0, 1, 1], [], []>} : vector<8x32xbf16>, vector<32x256xbf16>, vector<8x256xf32> -> vector<8x256xf32>
    %c2_124 = arith.constant 2 : index
    %c0_125 = arith.constant 0 : index
    %c0_126 = arith.constant 0 : index
    %142 = vector.load %arg10[%c2_124, %c0_125, %c0_126] : memref<4x8x1xf32, #tpu.memory_space<vmem>>, vector<1x8x1xf32>
    %143 = vector.shape_cast %142 : vector<1x8x1xf32> to vector<8x1xf32>
    %144 = vector.broadcast %143 : vector<8x1xf32> to vector<8x256xf32>
    %145 = arith.addf %141, %144 : vector<8x256xf32>
    %146 = math.exp %138 : vector<8x256xf32>
    %147 = arith.mulf %50, %146 : vector<8x256xf32>
    %148 = arith.addf %147, %145 : vector<8x256xf32>
    %149 = arith.addf %100, %138 : vector<8x256xf32>
    %c3 = arith.constant 3 : index
    %c0_127 = arith.constant 0 : index
    %c0_128 = arith.constant 0 : index
    %150 = vector.load %arg3[%c3, %c0_127, %c0_128] : memref<4x32x8xbf16, #tpu.memory_space<vmem>>, vector<1x32x8xbf16>
    %151 = vector.shape_cast %150 : vector<1x32x8xbf16> to vector<32x8xbf16>
    %152 = arith.truncf %148 : vector<8x256xf32> to vector<8x256xbf16>
    %cst_129 = arith.constant dense<0.000000e+00> : vector<32x256xf32>
    %153 = tpu.matmul %151, %152, %cst_129 {dimension_numbers = #tpu.dot_dimension_numbers<[1], [0], [0], [1], [0, 0, 1, 1], [], []>} : vector<32x8xbf16>, vector<8x256xbf16>, vector<32x256xf32> -> vector<32x256xf32>
    %c3_130 = arith.constant 3 : index
    %c0_131 = arith.constant 0 : index
    %c0_132 = arith.constant 0 : index
    %154 = vector.load %arg4[%c3_130, %c0_131, %c0_132] : memref<4x32x1xf32, #tpu.memory_space<vmem>>, vector<1x32x1xf32>
    %155 = vector.shape_cast %154 : vector<1x32x1xf32> to vector<32x1xf32>
    %156 = vector.broadcast %155 : vector<32x1xf32> to vector<32x256xf32>
    %157 = arith.addf %153, %156 : vector<32x256xf32>
    %cst_133 = arith.constant 0.000000e+00 : f32
    %158 = vector.broadcast %cst_133 : f32 to vector<32x256xf32>
    %159 = arith.maximumf %157, %158 : vector<32x256xf32>
    %c3_134 = arith.constant 3 : index
    %c0_135 = arith.constant 0 : index
    %c0_136 = arith.constant 0 : index
    %c0_137 = arith.constant 0 : index
    %160 = vector.load %arg5[%c3_134, %c0_135, %c0_136, %c0_137] : memref<4x2x32x32xbf16, #tpu.memory_space<vmem>>, vector<1x1x32x32xbf16>
    %161 = vector.shape_cast %160 : vector<1x1x32x32xbf16> to vector<32x32xbf16>
    %162 = arith.truncf %159 : vector<32x256xf32> to vector<32x256xbf16>
    %cst_138 = arith.constant dense<0.000000e+00> : vector<32x256xf32>
    %163 = tpu.matmul %161, %162, %cst_138 {dimension_numbers = #tpu.dot_dimension_numbers<[1], [0], [0], [1], [0, 0, 1, 1], [], []>} : vector<32x32xbf16>, vector<32x256xbf16>, vector<32x256xf32> -> vector<32x256xf32>
    %c3_139 = arith.constant 3 : index
    %c0_140 = arith.constant 0 : index
    %c0_141 = arith.constant 0 : index
    %c0_142 = arith.constant 0 : index
    %164 = vector.load %arg6[%c3_139, %c0_140, %c0_141, %c0_142] : memref<4x2x32x1xf32, #tpu.memory_space<vmem>>, vector<1x1x32x1xf32>
    %165 = vector.shape_cast %164 : vector<1x1x32x1xf32> to vector<32x1xf32>
    %166 = vector.broadcast %165 : vector<32x1xf32> to vector<32x256xf32>
    %167 = arith.addf %163, %166 : vector<32x256xf32>
    %cst_143 = arith.constant 0.000000e+00 : f32
    %168 = vector.broadcast %cst_143 : f32 to vector<32x256xf32>
    %169 = arith.maximumf %167, %168 : vector<32x256xf32>
    %c3_144 = arith.constant 3 : index
    %c1_145 = arith.constant 1 : index
    %c0_146 = arith.constant 0 : index
    %c0_147 = arith.constant 0 : index
    %170 = vector.load %arg5[%c3_144, %c1_145, %c0_146, %c0_147] : memref<4x2x32x32xbf16, #tpu.memory_space<vmem>>, vector<1x1x32x32xbf16>
    %171 = vector.shape_cast %170 : vector<1x1x32x32xbf16> to vector<32x32xbf16>
    %172 = arith.truncf %169 : vector<32x256xf32> to vector<32x256xbf16>
    %cst_148 = arith.constant dense<0.000000e+00> : vector<32x256xf32>
    %173 = tpu.matmul %171, %172, %cst_148 {dimension_numbers = #tpu.dot_dimension_numbers<[1], [0], [0], [1], [0, 0, 1, 1], [], []>} : vector<32x32xbf16>, vector<32x256xbf16>, vector<32x256xf32> -> vector<32x256xf32>
    %c3_149 = arith.constant 3 : index
    %c1_150 = arith.constant 1 : index
    %c0_151 = arith.constant 0 : index
    %c0_152 = arith.constant 0 : index
    %174 = vector.load %arg6[%c3_149, %c1_150, %c0_151, %c0_152] : memref<4x2x32x1xf32, #tpu.memory_space<vmem>>, vector<1x1x32x1xf32>
    %175 = vector.shape_cast %174 : vector<1x1x32x1xf32> to vector<32x1xf32>
    %176 = vector.broadcast %175 : vector<32x1xf32> to vector<32x256xf32>
    %177 = arith.addf %173, %176 : vector<32x256xf32>
    %cst_153 = arith.constant 0.000000e+00 : f32
    %178 = vector.broadcast %cst_153 : f32 to vector<32x256xf32>
    %179 = arith.maximumf %177, %178 : vector<32x256xf32>
    %180 = arith.truncf %179 : vector<32x256xf32> to vector<32x256xbf16>
    %c3_154 = arith.constant 3 : index
    %c0_155 = arith.constant 0 : index
    %c0_156 = arith.constant 0 : index
    %181 = vector.load %arg7[%c3_154, %c0_155, %c0_156] : memref<4x8x32xbf16, #tpu.memory_space<vmem>>, vector<1x8x32xbf16>
    %182 = vector.shape_cast %181 : vector<1x8x32xbf16> to vector<8x32xbf16>
    %cst_157 = arith.constant dense<0.000000e+00> : vector<8x256xf32>
    %183 = tpu.matmul %182, %180, %cst_157 {dimension_numbers = #tpu.dot_dimension_numbers<[1], [0], [0], [1], [0, 0, 1, 1], [], []>} : vector<8x32xbf16>, vector<32x256xbf16>, vector<8x256xf32> -> vector<8x256xf32>
    %c3_158 = arith.constant 3 : index
    %c0_159 = arith.constant 0 : index
    %c0_160 = arith.constant 0 : index
    %184 = vector.load %arg8[%c3_158, %c0_159, %c0_160] : memref<4x8x1xf32, #tpu.memory_space<vmem>>, vector<1x8x1xf32>
    %185 = vector.shape_cast %184 : vector<1x8x1xf32> to vector<8x1xf32>
    %186 = vector.broadcast %185 : vector<8x1xf32> to vector<8x256xf32>
    %187 = arith.addf %183, %186 : vector<8x256xf32>
    %c3_161 = arith.constant 3 : index
    %c0_162 = arith.constant 0 : index
    %c0_163 = arith.constant 0 : index
    %188 = vector.load %arg9[%c3_161, %c0_162, %c0_163] : memref<4x8x32xbf16, #tpu.memory_space<vmem>>, vector<1x8x32xbf16>
    %189 = vector.shape_cast %188 : vector<1x8x32xbf16> to vector<8x32xbf16>
    %cst_164 = arith.constant dense<0.000000e+00> : vector<8x256xf32>
    %190 = tpu.matmul %189, %180, %cst_164 {dimension_numbers = #tpu.dot_dimension_numbers<[1], [0], [0], [1], [0, 0, 1, 1], [], []>} : vector<8x32xbf16>, vector<32x256xbf16>, vector<8x256xf32> -> vector<8x256xf32>
    %c3_165 = arith.constant 3 : index
    %c0_166 = arith.constant 0 : index
    %c0_167 = arith.constant 0 : index
    %191 = vector.load %arg10[%c3_165, %c0_166, %c0_167] : memref<4x8x1xf32, #tpu.memory_space<vmem>>, vector<1x8x1xf32>
    %192 = vector.shape_cast %191 : vector<1x8x1xf32> to vector<8x1xf32>
    %193 = vector.broadcast %192 : vector<8x1xf32> to vector<8x256xf32>
    %194 = arith.addf %190, %193 : vector<8x256xf32>
    %195 = math.exp %187 : vector<8x256xf32>
    %196 = arith.mulf %99, %195 : vector<8x256xf32>
    %197 = arith.addf %196, %194 : vector<8x256xf32>
    %198 = arith.addf %149, %187 : vector<8x256xf32>
    %c0_168 = arith.constant 0 : index
    %c0_169 = arith.constant 0 : index
    %199 = vector.load %arg11[%c0_168, %c0_169] : memref<8x256xf32, #tpu.memory_space<vmem>>, vector<8x256xf32>
    tpu.vector_store %arg11[%c0_168, %c0_169], %197 {strides = array<i32>} : memref<8x256xf32, #tpu.memory_space<vmem>>, vector<8x256xf32>,
    %c0_170 = arith.constant 0 : index
    %c0_171 = arith.constant 0 : index
    %200 = vector.load %arg12[%c0_170, %c0_171] : memref<8x256xf32, #tpu.memory_space<vmem>>, vector<8x256xf32>
    tpu.vector_store %arg12[%c0_170, %c0_171], %148 {strides = array<i32>} : memref<8x256xf32, #tpu.memory_space<vmem>>, vector<8x256xf32>,
    %201 = arith.mulf %197, %197 : vector<8x256xf32>
    %202 = arith.mulf %148, %148 : vector<8x256xf32>
    %203 = arith.addf %201, %202 : vector<8x256xf32>
    %cst_172 = arith.constant 5.000000e-01 : f32
    %204 = vector.broadcast %cst_172 : f32 to vector<8x256xf32>
    %205 = arith.mulf %204, %203 : vector<8x256xf32>
    %206 = arith.subf %198, %205 : vector<8x256xf32>
    %cst_173 = arith.constant dense<0.000000e+00> : vector<256xf32>
    %207 = vector.multi_reduction <add>, %206, %cst_173 [0] : vector<8x256xf32> to vector<256xf32>
    %208 = vector.shape_cast %207 : vector<256xf32> to vector<1x256xf32>
    %cst_174 = arith.constant 14.7030163 : f32
    %209 = vector.broadcast %cst_174 : f32 to vector<1x256xf32>
    %210 = arith.subf %208, %209 : vector<1x256xf32>
    %c0_175 = arith.constant 0 : index
    %c0_176 = arith.constant 0 : index
    %211 = vector.load %arg13[%c0_175, %c0_176] : memref<1x256xf32, #tpu.memory_space<vmem>>, vector<1x256xf32>
    tpu.vector_store %arg13[%c0_175, %c0_176], %210 {strides = array<i32>} : memref<1x256xf32, #tpu.memory_space<vmem>>, vector<1x256xf32>,
    return
  }
  func.func @transform_0(%arg0: i32) -> (i32, i32) {
    %c0_i32 = arith.constant 0 : i32
    %c0_i32_0 = arith.constant 0 : i32
    return %c0_i32, %arg0 : i32, i32
  }
  func.func @transform_1(%arg0: i32) -> (i32, i32) {
    %c0_i32 = arith.constant 0 : i32
    %c0_i32_0 = arith.constant 0 : i32
    return %c0_i32, %arg0 : i32, i32
  }
  func.func @transform_2(%arg0: i32) -> (i32, i32, i32) {
    %c0_i32 = arith.constant 0 : i32
    %c0_i32_0 = arith.constant 0 : i32
    %c0_i32_1 = arith.constant 0 : i32
    %c0_i32_2 = arith.constant 0 : i32
    return %c0_i32, %c0_i32_0, %c0_i32_1 : i32, i32, i32
  }
  func.func @transform_3(%arg0: i32) -> (i32, i32, i32) {
    %c0_i32 = arith.constant 0 : i32
    %c0_i32_0 = arith.constant 0 : i32
    %c0_i32_1 = arith.constant 0 : i32
    %c0_i32_2 = arith.constant 0 : i32
    return %c0_i32, %c0_i32_0, %c0_i32_1 : i32, i32, i32
  }
  func.func @transform_4(%arg0: i32) -> (i32, i32, i32, i32) {
    %c0_i32 = arith.constant 0 : i32
    %c0_i32_0 = arith.constant 0 : i32
    %c0_i32_1 = arith.constant 0 : i32
    %c0_i32_2 = arith.constant 0 : i32
    %c0_i32_3 = arith.constant 0 : i32
    return %c0_i32, %c0_i32_0, %c0_i32_1, %c0_i32_2 : i32, i32, i32, i32
  }
  func.func @transform_5(%arg0: i32) -> (i32, i32, i32, i32) {
    %c0_i32 = arith.constant 0 : i32
    %c0_i32_0 = arith.constant 0 : i32
    %c0_i32_1 = arith.constant 0 : i32
    %c0_i32_2 = arith.constant 0 : i32
    %c0_i32_3 = arith.constant 0 : i32
    return %c0_i32, %c0_i32_0, %c0_i32_1, %c0_i32_2 : i32, i32, i32, i32
  }
  func.func @transform_6(%arg0: i32) -> (i32, i32, i32) {
    %c0_i32 = arith.constant 0 : i32
    %c0_i32_0 = arith.constant 0 : i32
    %c0_i32_1 = arith.constant 0 : i32
    %c0_i32_2 = arith.constant 0 : i32
    return %c0_i32, %c0_i32_0, %c0_i32_1 : i32, i32, i32
  }
  func.func @transform_7(%arg0: i32) -> (i32, i32, i32) {
    %c0_i32 = arith.constant 0 : i32
    %c0_i32_0 = arith.constant 0 : i32
    %c0_i32_1 = arith.constant 0 : i32
    %c0_i32_2 = arith.constant 0 : i32
    return %c0_i32, %c0_i32_0, %c0_i32_1 : i32, i32, i32
  }
  func.func @transform_8(%arg0: i32) -> (i32, i32, i32) {
    %c0_i32 = arith.constant 0 : i32
    %c0_i32_0 = arith.constant 0 : i32
    %c0_i32_1 = arith.constant 0 : i32
    %c0_i32_2 = arith.constant 0 : i32
    return %c0_i32, %c0_i32_0, %c0_i32_1 : i32, i32, i32
  }
  func.func @transform_9(%arg0: i32) -> (i32, i32, i32) {
    %c0_i32 = arith.constant 0 : i32
    %c0_i32_0 = arith.constant 0 : i32
    %c0_i32_1 = arith.constant 0 : i32
    %c0_i32_2 = arith.constant 0 : i32
    return %c0_i32, %c0_i32_0, %c0_i32_1 : i32, i32, i32
  }
  func.func @transform_10(%arg0: i32) -> (i32, i32) {
    %c0_i32 = arith.constant 0 : i32
    %c0_i32_0 = arith.constant 0 : i32
    return %c0_i32, %arg0 : i32, i32
  }
  func.func @transform_11(%arg0: i32) -> (i32, i32) {
    %c0_i32 = arith.constant 0 : i32
    %c0_i32_0 = arith.constant 0 : i32
    return %c0_i32, %arg0 : i32, i32
  }
  func.func @transform_12(%arg0: i32) -> (i32, i32) {
    %c0_i32 = arith.constant 0 : i32
    %c0_i32_0 = arith.constant 0 : i32
    return %c0_i32, %arg0 : i32, i32
  }
}

</mosaic_0001>

<bundles_post_ra>
// kernel: tpu_custom_call.1
= control target key start
LH: loop header
LB: loop body
LE: loop exit
PB: predicated region body
PF: predicated region fallthrough
CT: control target
= control target key end

     0   :  { %s3328_s0 = inlined_call_operand.vmem [shape: f32[8,512], index: 0, kind: input, shape index: {}]   ;;  %s3329_s1 = inlined_call_operand.vmem [shape: f32[8,512], index: 1, kind: input, shape index: {}]   ;;  %s3330_s2 = inlined_call_operand.vmem [shape: bf16[4,32,8], index: 2, kind: input, shape index: {}]   ;;  %s3331_s3 = inlined_call_operand.vmem [shape: f32[4,32,1], index: 3, kind: input, shape index: {}]   ;;  %s3332_s4 = inlined_call_operand.vmem [shape: bf16[4,2,32,32], index: 4, kind: input, shape index: {}]   ;;  %s3333_s5 = inlined_call_operand.vmem [shape: f32[4,2,32,1], index: 5, kind: input, shape index: {}]   ;;  %s3334_s6 = inlined_call_operand.vmem [shape: bf16[4,8,32], index: 6, kind: input, shape index: {}]   ;;  %s3335_s7 = inlined_call_operand.vmem [shape: f32[4,8,1], index: 7, kind: input, shape index: {}]   ;;  %s3336_s8 = inlined_call_operand.vmem [shape: bf16[4,8,32], index: 8, kind: input, shape index: {}]   ;;  %s3337_s9 = inlined_call_operand.vmem [shape: f32[4,8,1], index: 9, kind: input, shape index: {}]   ;;  %s3338_s10 = inlined_call_operand.hbm [shape: f32[8,512], index: 10, kind: output, shape index: {0}]   ;;  %s3339_s11 = inlined_call_operand.hbm [shape: f32[8,512], index: 11, kind: output, shape index: {1}]   ;;  %s3340_s12 = inlined_call_operand.hbm [shape: f32[1,512], index: 12, kind: output, shape index: {2}]  }
   0x1   :  { %3345 = sst [smem:[#allocation11_spill]] %s3328_s0 }
   0x2   :  { %3346 = sst [smem:[#allocation12_spill]] %s3329_s1 }
   0x3   :  { %3347 = sst [smem:[#allocation13_spill]] %s3330_s2 }
   0x4   :  { %3348 = sst [smem:[#allocation14_spill]] %s3331_s3 }
   0x5   :  { %3349 = sst [smem:[#allocation15_spill]] %s3332_s4 }
   0x6   :  { %3350 = sst [smem:[#allocation16_spill]] %s3333_s5 }
   0x7   :  { %18 = vsyncpa [#allocation3], 0 }
   0x8   :  { %20 = vsyncpa [#allocation3 + $0x1], 0 }
   0x9   :  { %21 = vsyncpa [#allocation5], 0 }
   0xa   :  { %23 = vsyncpa [#allocation5 + $0x1], 0  ;;  %s2774_s21 = smov 0   ;;  %s2776_s22 = smov 0  }
   0xb   :  { %s2778_s23 = smov 0   ;;  %s2780_s24 = smov 0  }
   0xc LB: > { %3351 = sst [smem:[#allocation9_spill]] %s2702_s23  ;;  %s2795_s25 = sadd.s32 4294967295, %s2706_s24   ;;  %s2706_s24 = sphi %s2780_s24, %s3368_s24   ;;  %s2702_s23 = sphi %s2778_s23, %s3365_s23   ;;  %s2698_s22 = sphi %s2776_s22, %s3367_s22   ;;  %s2694_s21 = sphi %s2774_s21, %s3366_s21  }
   0xd   : > { %s3341_s26 = sadd.s32 4294967294, %s2706_s24   ;;  %s2799_s27 = sadd.s32 1, %s2706_s24  }
   0xe   : > { %s256_s28 = sadd.s32 1, %s2702_s23  ;;  %s253_s29 = ssub.s32 %s2706_s24, %s2799_s27 }
   0xf   : > { %p266_p0 = scmp.ne.s32.totalorder %s2702_s23, %s2698_s22  ;;  %p254_p1 = scmp.eq.s32.totalorder %s253_s29, 0 }
  0x10   : > { %p267_p2 = scmp.eq.s32.totalorder %s2795_s25, 1  ;;  %p272_p3 = scmp.ne.s32.totalorder %s2698_s22, %s2694_s21 }
  0x11   : > { %p273_p4 = scmp.eq.s32.totalorder %s3341_s26, 1  ;;  %p2217_p7 = scmp.ge.s32.totalorder %s2706_s24, 1 }
  0x12   : > { %s2812_s30 = scalar_select %p254_p1, %s2702_s23, %s256_s28  }
  0x13   : > { %p2814_p5 = por %p267_p2, %p266_p0  ;;  %p2818_p6 = por %p273_p4, %p272_p3 }
  0x14   : > { %3352 = sst [smem:[#allocation10_spill]] %s2812_s30  ;;  %p385_p8 = scmp.lt.s32.totalorder %s2706_s24, 3 }
  0x16   : > { %p386_p9 = pnand %p2217_p7, %p385_p8 }
  0x17   : > { %s3355_s3 = sld [smem:[#allocation14_spill]] (!%p386_p9)  ;;  %s2831_s19 = sshll.u32 (!%p386_p9), %s2795_s25, 1 }
  0x18   : > { %389 = sbr.rel (%p386_p9) target bundleno = 2674 (0xa72), region = 60  ;;  %p443_p10 = scmp.lt.s32.totalorder (!%p386_p9), %s2831_s19, 3 }
  0x19   : > { %s3356_s0 = sld [smem:[#allocation11_spill]] (!%p386_p9)  ;;  %s2029_s17 = sand.u32 (!%p386_p9), 1, %s2795_s25  }
  0x1a   : > { %s3357_s2 = sld [smem:[#allocation13_spill]] (!%p386_p9) }
  0x1b   : > { %s3358_s5 = sld [smem:[#allocation16_spill]] (!%p386_p9) }
  0x1c   : > { %s3359_s4 = sld [smem:[#allocation15_spill]] (!%p386_p9) }
  0x1d   : > { %v470_v0 = vld [vmem:[%s3355_s3 + $0x10] sm:$0xff]  ;;  %v468_v1 = vld [vmem:[%s3355_s3] sm:$0xff]  ;;  %v2708_v2 = vmov 0   ;;  %s2835_s20 = scalar_select %p443_p10, %s2831_s19, 3  ;;  %v471_v3 = vld [vmem:[%s3355_s3 + $0x18] sm:$0xff]  ;;  %vm509_vm0 = vcmask 1043456  }
  0x1e   : > { %2566 = vset.pattern.permute.xlu1 %v2708_v2  ;;  %2565 = vset.pattern.permute.xlu0 %v2708_v2  ;;  %v469_v4 = vld [vmem:[%s3355_s3 + $0x8] sm:$0xff]  ;;  %vm502_vm1 = vcmask 64512   ;;  %v758_v17 = vld [vmem:[%s3335_s7] sm:$0xff]  ;;  %v2280_v19 = vld [vmem:[%s3355_s3 + $0x38] sm:$0xff]  ;;  %vm604_vm2 = vcmask 261120   ;;  %s3361_s1 = sld [smem:[#allocation12_spill]] }
  0x1f   : > { %484 = vperm.xlu0 %2565, %v470_v0   ;;  %474 = vperm.xlu1 %2566, %v468_v1   ;;  %s3342_s28 = sshll.u32 %s2835_s20, 3  ;;  %v794_v18 = vld [vmem:[%s3337_s9] sm:$0xff]  ;;  %v2338_v29 = vld [vmem:[%s3337_s9 + $0x8] sm:$0xff]  ;;  %v2347_v30 = vld [vmem:[%s3355_s3 + $0x50] sm:$0xff]  ;;  %s3360_s29 = sshll.u32 %s2835_s20, 3 }
  0x20   : > { %2567 = vset.pattern.permute.xlu2 %v2708_v2  ;;  %s446_s18 = scalar_lea.vmem %s3356_s0, %s3342_s28  ;;  %v2489_v11 = vld [vmem:[%s3357_s2] sm:$0xff]  ;;  %v2490_v16 = vld [vmem:[%s3357_s2 + $0x8] sm:$0xff]  ;;  %v2279_v37 = vld [vmem:[%s3355_s3 + $0x30] sm:$0xff]  ;;  %s2513_s28 = sshll.u32 %s2795_s25, 4 }
  0x21   : > { %v2849_v5 = vld [vmem:[%s446_s18] sm:$0xff]  ;;  %v2851_v6 = vld [vmem:[%s446_s18 + $0x8] sm:$0xff]  ;;  %v2256_v14 = vld [vmem:[%s3358_s5 + $0x38] sm:$0xff]  ;;  %s2061_s23 = scalar_lea.hbm %s3339_s11, %s2513_s28 }
  0x22   : > { %v466_v7 = vpack.c.bf16 %v2849_v5, %v2849_v5  ;;  %v467_v8 = vpack.c.bf16 %v2851_v6, %v2851_v6  ;;  %v570_v12 = vld [vmem:[%s3358_s5] sm:$0xff]  ;;  %v571_v13 = vld [vmem:[%s3358_s5 + $0x8] sm:$0xff]  ;;  %v2299_v21 = vld [vmem:[%s3358_s5 + $0x50] sm:$0xff] }
  0x23   : > { %v2253_v15 = vld [vmem:[%s3358_s5 + $0x20] sm:$0xff]  ;;  %v2300_v22 = vld [vmem:[%s3358_s5 + $0x58] sm:$0xff]  ;;  %v2298_v23 = vld [vmem:[%s3358_s5 + $0x48] sm:$0xff] }
  0x24   : > { %v511_v9 = vsel %vm509_vm0, %v466_v7, 0  ;;  %v514_v10 = vsel %vm509_vm0, %v467_v8, 0  ;;  %v2277_v20 = vld [vmem:[%s3355_s3 + $0x20] sm:$0xff]  ;;  %v2319_v24 = vld [vmem:[%s3358_s5 + $0x70] sm:$0xff]  ;;  %v2318_v27 = vld [vmem:[%s3358_s5 + $0x68] sm:$0xff]  ;;  %s452_s15 = scalar_lea.vmem %s3361_s1, %s3360_s29  ;;  %s3254_s1 = scalar_lea.sflag [#allocation5], %s2029_s17 }
  0x25   : > { %523 = vmatpush.bf16.msra.mxu0 %v511_v9  ;;  %542 = vmatpush.bf16.msra.mxu1 %v514_v10  ;;  %v572_v25 = vld [vmem:[%s3358_s5 + $0x10] sm:$0xff]  ;;  %v2317_v26 = vld [vmem:[%s3358_s5 + $0x60] sm:$0xff]  ;;  %v573_v28 = vld [vmem:[%s3358_s5 + $0x18] sm:$0xff] }
  0x26   : > { %586 = vperm.xlu2 %2567, %v572_v25   ;;  %v2255_v31 = vld [vmem:[%s3358_s5 + $0x30] sm:$0xff]  ;;  %v2345_v32 = vld [vmem:[%s3355_s3 + $0x40] sm:$0xff]  ;;  %v2346_v33 = vld [vmem:[%s3355_s3 + $0x48] sm:$0xff] }
  0x27   : > { %489 = vperm.xlu0 %2565, %v471_v3   ;;  %479 = vperm.xlu1 %2566, %v469_v4   ;;  %v2254_v34 = vld [vmem:[%s3358_s5 + $0x28] sm:$0xff]  ;;  %v2368_v35 = vld [vmem:[%s3358_s5 + $0x98] sm:$0xff]  ;;  %v2365_v36 = vld [vmem:[%s3358_s5 + $0x80] sm:$0xff] }
  0x28   : > { %2233 = vmatmul.msk.bf16.vlgmr.msra.gmra.mxu0 %vm502_vm1, %v2489_v11  ;;  %2235 = vmatmul.msk.bf16.vlgmr.msra.gmra.mxu1 %vm502_vm1, %v2489_v11  ;;  %v2387_v38 = vld [vmem:[%s3358_s5 + $0xb0] sm:$0xff]  ;;  %v2388_v39 = vld [vmem:[%s3358_s5 + $0xb8] sm:$0xff]  ;;  %v2278_v40 = vld [vmem:[%s3355_s3 + $0x28] sm:$0xff] }
  0x29   : > { %v2386_v41 = vld [vmem:[%s3358_s5 + $0xa8] sm:$0xff]  ;;  %v2402_v42 = vld [vmem:[%s3335_s7 + $0x10] sm:$0xff]  ;;  %v2297_v43 = vld [vmem:[%s3358_s5 + $0x40] sm:$0xff] }
  0x2a   : > { %v2415_v44 = vld [vmem:[%s3355_s3 + $0x70] sm:$0xff]  ;;  %v2416_v45 = vld [vmem:[%s3355_s3 + $0x78] sm:$0xff]  ;;  %v2414_v47 = vld [vmem:[%s3355_s3 + $0x68] sm:$0xff] }
  0x2b   : > { %v2320_v46 = vld [vmem:[%s3358_s5 + $0x78] sm:$0xff]  ;;  %v2435_v48 = vld [vmem:[%s3358_s5 + $0xd0] sm:$0xff]  ;;  %v2334_v49 = vld [vmem:[%s3335_s7 + $0x8] sm:$0xff] }
  0x2c   : > { %v2433_v50 = vld [vmem:[%s3358_s5 + $0xc0] sm:$0xff]  ;;  %v2434_v51 = vld [vmem:[%s3358_s5 + $0xc8] sm:$0xff]  ;;  %v2348_v52 = vld [vmem:[%s3355_s3 + $0x58] sm:$0xff] }
  0x2d   : > { %v2456_v53 = vld [vmem:[%s3358_s5 + $0xf8] sm:$0xff]  ;;  %v2453_v54 = vld [vmem:[%s3358_s5 + $0xe0] sm:$0xff]  ;;  %v2367_v59 = vld [vmem:[%s3358_s5 + $0x90] sm:$0xff] }
  0x2e   : > { %591 = vperm.xlu2 %2567, %v573_v28   ;;  %v2470_v57 = vld [vmem:[%s3335_s7 + $0x18] sm:$0xff]  ;;  %v2366_v0 = vld [vmem:[%s3358_s5 + $0x88] sm:$0xff]  ;;  %v2385_v3 = vld [vmem:[%s3358_s5 + $0xa0] sm:$0xff] }
  0x2f   : > { %576 = vperm.xlu0 %2565, %v570_v12   ;;  %581 = vperm.xlu1 %2566, %v571_v13   ;;  %v2474_v58 = vld [vmem:[%s3337_s9 + $0x18] sm:$0xff] }
  0x36   : > { %683 = vperm.xlu2 %2567, %v2255_v31   ;;  %v2491_v31 = vld [vmem:[%s3359_s4] sm:$0xff] }
  0x37   : > { %688 = vperm.xlu0 %2565, %v2256_v14   ;;  %673 = vperm.xlu1 %2566, %v2253_v15  }
  0x38   : > { %2234 = vmatmul.msk.bf16.gmra.mxu0 %vm502_vm1, %v2490_v16  ;;  %2236 = vmatmul.msk.bf16.gmra.mxu1 %vm502_vm1, %v2490_v16 }
  0x3e   : > { %678 = vperm.xlu2 %2567, %v2254_v34   ;;  %v2492_v34 = vld [vmem:[%s3359_s4 + $0x8] sm:$0xff] }
  0x3f   : > { %761 = vperm.xlu0 %2565, %v758_v17   ;;  %797 = vperm.xlu1 %2566, %v794_v18  }
  0x46   : > { %863 = vperm.xlu2 %2567, %v2279_v37  }
  0x47   : > { %868 = vperm.xlu0 %2565, %v2280_v19   ;;  %853 = vperm.xlu1 %2566, %v2277_v20  }
  0x4e   : > { %858 = vperm.xlu2 %2567, %v2278_v40  }
  0x4f   : > { %965 = vperm.xlu0 %2565, %v2299_v21   ;;  %970 = vperm.xlu1 %2566, %v2300_v22  }
  0x56   : > { %955 = vperm.xlu2 %2567, %v2297_v43  }
  0x57   : > { %960 = vperm.xlu0 %2565, %v2298_v23   ;;  %1061 = vperm.xlu1 %2566, %v2319_v24  }
  0x5e   : > { %1066 = vperm.xlu2 %2567, %v2320_v46  }
  0x5f   : > { %1051 = vperm.xlu0 %2565, %v2317_v26   ;;  %1056 = vperm.xlu1 %2566, %v2318_v27   ;;  %v2406_v26 = vld [vmem:[%s3337_s9 + $0x10] sm:$0xff] }
  0x66   : > { %1141 = vperm.xlu2 %2567, %v2334_v49  }
  0x67   : > { %1179 = vperm.xlu0 %2565, %v2338_v29   ;;  %1245 = vperm.xlu1 %2566, %v2347_v30  }
  0x6e   : > { %1250 = vperm.xlu2 %2567, %v2348_v52  }
  0x6f   : > { %1235 = vperm.xlu0 %2565, %v2345_v32   ;;  %1240 = vperm.xlu1 %2566, %v2346_v33   ;;  %v2413_v32 = vld [vmem:[%s3355_s3 + $0x60] sm:$0xff]  ;;  %v2436_v33 = vld [vmem:[%s3358_s5 + $0xd8] sm:$0xff] }
  0x76   : > { %1347 = vperm.xlu2 %2567, %v2367_v59  }
  0x77   : > { %1352 = vperm.xlu0 %2565, %v2368_v35   ;;  %1337 = vperm.xlu1 %2566, %v2365_v36   ;;  %v2455_v35 = vld [vmem:[%s3358_s5 + $0xf0] sm:$0xff]  ;;  %v2454_v36 = vld [vmem:[%s3358_s5 + $0xe8] sm:$0xff] }
  0x7e   : > { %1342 = vperm.xlu2 %2567, %v2366_v0  }
  0x7f   : > { %1443 = vperm.xlu0 %2565, %v2387_v38   ;;  %1448 = vperm.xlu1 %2566, %v2388_v39  }
  0x86   : > { %1433 = vperm.xlu2 %2567, %v2385_v3  }
  0x87   : > { %1438 = vperm.xlu0 %2565, %v2386_v41   ;;  %1523 = vperm.xlu1 %2566, %v2402_v42   ;;  %v587_v41 = vpop.permute.xlu2 %586 }
  0x8e   : > { %1561 = vperm.xlu2 %2567, %v2406_v26  }
  0x8f   : > { %1627 = vperm.xlu0 %2565, %v2415_v44   ;;  %1632 = vperm.xlu1 %2566, %v2416_v45   ;;  %v592_v45 = vpop.permute.xlu2 %591 }
  0x91   : > { %v485_v62 = vpop.permute.xlu0 %484  ;;  %v475_v63 = vpop.permute.xlu1 %474 }
  0x96   : > { %1617 = vperm.xlu2 %2567, %v2413_v32  }
  0x97   : > { %1622 = vperm.xlu0 %2565, %v2414_v47   ;;  %1729 = vperm.xlu1 %2566, %v2435_v48  }
  0x99   : > { %v490_v4 = vpop.permute.xlu0 %489  ;;  %v480_v7 = vpop.permute.xlu1 %479 }
  0x9e   : > { %1734 = vperm.xlu2 %2567, %v2436_v33  }
  0x9f   : > { %1719 = vperm.xlu0 %2565, %v2433_v50   ;;  %1724 = vperm.xlu1 %2566, %v2434_v51  }
  0xa1   : > { %v582_v44 = vpop.permute.xlu1 %581  ;;  %v577_v50 = vpop.permute.xlu0 %576 }
  0xa5   : > { %v525_v55 = vpop.f32.mrf.mxu0  ;;  %v544_v56 = vpop.f32.mrf.mxu1 }
  0xa6   : > { %v526_v16 = vadd.f32 %v525_v55, %v475_v63  ;;  %v545_v17 = vadd.f32 %v544_v56, %v475_v63  ;;  %1825 = vperm.xlu2 %2567, %v2455_v35  }
  0xa7   : > { %1830 = vperm.xlu0 %2565, %v2456_v53   ;;  %1815 = vperm.xlu1 %2566, %v2453_v54  }
  0xa8   : > { %v554_v27 = vmax.f32 %v526_v16, 0.0  ;;  %v555_v28 = vmax.f32 %v545_v17, 0.0 }
  0xa9   : > { %v689_v16 = vpop.permute.xlu0 %688 }
  0xad   : > { %v527_v60 = vpop.f32.mrf.mxu0  ;;  %v546_v61 = vpop.f32.mrf.mxu1 }
  0xae   : > { %v528_v12 = vadd.f32 %v527_v60, %v480_v7  ;;  %v547_v13 = vadd.f32 %v546_v61, %v480_v7  ;;  %1820 = vperm.xlu2 %2567, %v2454_v36   ;;  %v2493_v7 = vld [vmem:[%s3359_s4 + $0x10] sm:$0xff] }
  0xaf   : > { %1905 = vperm.xlu0 %2565, %v2470_v57   ;;  %1943 = vperm.xlu1 %2566, %v2474_v58  }
  0xb0   : > { %v556_v22 = vmax.f32 %v528_v12, 0.0  ;;  %v557_v23 = vmax.f32 %v547_v13, 0.0  ;;  %v684_v13 = vpop.permute.xlu2 %683 }
  0xb2   : > { %v566_v29 = vpack.c.bf16 %v556_v22, %v554_v27  ;;  %v567_v30 = vpack.c.bf16 %v557_v23, %v555_v28  ;;  %v674_v22 = vpop.permute.xlu1 %673 }
  0xb5   : > { %v530_v1 = vpop.f32.mrf.mxu0  ;;  %v549_v2 = vpop.f32.mrf.mxu1 }
  0xb6   : > { %v531_v8 = vadd.f32 %v530_v1, %v485_v62  ;;  %v550_v9 = vadd.f32 %v549_v2, %v485_v62 }
  0xb8   : > { %v558_v18 = vmax.f32 %v531_v8, 0.0  ;;  %v559_v19 = vmax.f32 %v550_v9, 0.0  ;;  %v2494_v8 = vld [vmem:[%s3359_s4 + $0x18] sm:$0xff]  ;;  %v679_v17 = vpop.permute.xlu2 %678 }
  0xbd   : > { %v532_v10 = vpop.f32.mrf.mxu0  ;;  %v551_v11 = vpop.f32.mrf.mxu1 }
  0xbe   : > { %v533_v14 = vadd.f32 %v532_v10, %v490_v4  ;;  %v552_v15 = vadd.f32 %v551_v11, %v490_v4 }
  0xc0   : > { %v560_v20 = vmax.f32 %v533_v14, 0.0  ;;  %v561_v21 = vmax.f32 %v552_v15, 0.0 }
  0xc2   : > { %v568_v24 = vpack.c.bf16 %v560_v20, %v558_v18  ;;  %v569_v25 = vpack.c.bf16 %v561_v21, %v559_v19 }
  0xc4   : > { %617 = vmatpush.bf16.msra.mxu2 %v568_v24  ;;  %636 = vmatpush.bf16.msra.mxu3 %v569_v25 }
  0xc8   : > { %618 = vmatpush.bf16.msra.mxu2 %v566_v29  ;;  %637 = vmatpush.bf16.msra.mxu3 %v567_v30 }
  0xcb   : > { %2245 = vmatmul.msk.bf16.vlgmr.msra.gmra.mxu2 %vm604_vm2, %v2491_v31  ;;  %2247 = vmatmul.msk.bf16.vlgmr.msra.gmra.mxu3 %vm604_vm2, %v2491_v31 }
  0xdb   : > { %2246 = vmatmul.msk.bf16.gmra.mxu2 %vm604_vm2, %v2492_v34  ;;  %2248 = vmatmul.msk.bf16.gmra.mxu3 %vm604_vm2, %v2492_v34 }
 0x14e   : > { %v620_v37 = vpop.f32.mrf.mxu2  ;;  %v639_v38 = vpop.f32.mrf.mxu3 }
 0x14f   : > { %v621_v55 = vadd.f32 %v620_v37, %v577_v50  ;;  %v640_v56 = vadd.f32 %v639_v38, %v577_v50 }
 0x151   : > { %v649_v1 = vmax.f32 %v621_v55, 0.0  ;;  %v650_v2 = vmax.f32 %v640_v56, 0.0  ;;  %v461_v55 = vld [vmem:[%s452_s15 + $0x8] sm:$0xff]  ;;  %v798_v56 = vpop.permute.xlu1 %797 }
 0x156   : > { %v622_v39 = vpop.f32.mrf.mxu2  ;;  %v641_v40 = vpop.f32.mrf.mxu3 }
 0x157   : > { %v623_v51 = vadd.f32 %v622_v39, %v582_v44  ;;  %v642_v52 = vadd.f32 %v641_v40, %v582_v44 }
 0x159   : > { %v651_v61 = vmax.f32 %v623_v51, 0.0  ;;  %v652_v62 = vmax.f32 %v642_v52, 0.0 }
 0x15b   : > { %v662_v3 = vpack.c.bf16 %v651_v61, %v649_v1  ;;  %v663_v4 = vpack.c.bf16 %v652_v62, %v650_v2 }
 0x15e   : > { %v625_v42 = vpop.f32.mrf.mxu2  ;;  %v644_v43 = vpop.f32.mrf.mxu3 }
 0x15f   : > { %v626_v46 = vadd.f32 %v625_v42, %v587_v41  ;;  %v645_v47 = vadd.f32 %v644_v43, %v587_v41  ;;  %v757_v41 = vld [vmem:[%s3334_s6] sm:$0xf]  ;;  %v762_v43 = vpop.permute.xlu0 %761 }
 0x160   : > { %v793_v42 = vld [vmem:[%s3336_s8] sm:$0xf] }
 0x161   : > { %v653_v57 = vmax.f32 %v626_v46, 0.0  ;;  %v654_v58 = vmax.f32 %v645_v47, 0.0 }
 0x166   : > { %v627_v48 = vpop.f32.mrf.mxu2  ;;  %v646_v49 = vpop.f32.mrf.mxu3 }
 0x167   : > { %v628_v53 = vadd.f32 %v627_v48, %v592_v45  ;;  %v647_v54 = vadd.f32 %v646_v49, %v592_v45 }
 0x169   : > { %v655_v59 = vmax.f32 %v628_v53, 0.0  ;;  %v656_v60 = vmax.f32 %v647_v54, 0.0  ;;  %v460_v54 = vld [vmem:[%s452_s15] sm:$0xff]  ;;  %s3183_s15 = sand.u32 1, %s2698_s22  }
 0x16a   : > { %s3344_s20 = sshll.u32 %s3183_s15, 4 }
 0x16b   : > { %v664_v63 = vpack.c.bf16 %v655_v59, %v653_v57  ;;  %v665_v0 = vpack.c.bf16 %v656_v60, %v654_v58  ;;  %s3198_s16 = scalar_lea.vmem [#allocation4], %s3344_s20  ;;  %s2065_s20 = sshll.u32 %s2061_s23, 4  ;;  %s2066_s20 = int_to_ptr.hbm [resolvable:$true] %s2065_s20 }
 0x16c   : > { %s2063_s29 = sshll.u32 %s3198_s16, 4  ;;  %s2598_s26 = sshra.s32 %s2066_s20, 4  ;;  %s2064_s29 = int_to_ptr.vmem [resolvable:$true] %s2063_s29  ;;  %s2599_s26 = int_to_ptr.hbm [resolvable:$true] %s2598_s26 }
 0x16d   : > { %713 = vmatpush.bf16.msrb.mxu0 %v664_v63  ;;  %732 = vmatpush.bf16.msrb.mxu1 %v665_v0  ;;  %s2600_s30 = scalar_lea.hbm %s2599_s26, 16  ;;  %p2605_p0 = scmp.lt.s32.totalorder %s2599_s26, %s3339_s11 }
 0x16e   : > { %p2601_p11 = scmp.ne.s32.totalorder %s2599_s26, %s2600_s30 }
 0x170   : > { %p2602_p12 = pnand %p2601_p11, %p2814_p5 }
 0x171   : > { %714 = vmatpush.bf16.msrb.mxu0 %v662_v3  ;;  %733 = vmatpush.bf16.msrb.mxu1 %v663_v4 }
 0x172   : > { %p2603_p13 = pneg %p2602_p12 }
 0x174   : > { %2265 = vmatmul.msk.bf16.vlgmr.msrb.gmra.mxu0 %vm604_vm2, %v2493_v7  ;;  %2267 = vmatmul.msk.bf16.vlgmr.msrb.gmra.mxu1 %vm604_vm2, %v2493_v7  ;;  %v2495_v7 = vld [vmem:[%s3357_s2 + $0x10] sm:$0xff] }
 0x184   : > { %2266 = vmatmul.msk.bf16.gmra.mxu0 %vm604_vm2, %v2494_v8  ;;  %2268 = vmatmul.msk.bf16.gmra.mxu1 %vm604_vm2, %v2494_v8 }
 0x1f1   : > { %v716_v9 = vpop.f32.mrf.mxu0  ;;  %v735_v10 = vpop.f32.mrf.mxu1 }
 0x1f2   : > { %v717_v27 = vadd.f32 %v716_v9, %v674_v22  ;;  %v736_v28 = vadd.f32 %v735_v10, %v674_v22  ;;  %v2496_v10 = vld [vmem:[%s3357_s2 + $0x18] sm:$0xff] }
 0x1f4   : > { %v745_v37 = vmax.f32 %v717_v27, 0.0  ;;  %v746_v38 = vmax.f32 %v736_v28, 0.0 }
 0x1f9   : > { %v718_v11 = vpop.f32.mrf.mxu0  ;;  %v737_v12 = vpop.f32.mrf.mxu1 }
 0x1fa   : > { %v719_v23 = vadd.f32 %v718_v11, %v679_v17  ;;  %v738_v24 = vadd.f32 %v737_v12, %v679_v17 }
 0x1fc   : > { %v747_v33 = vmax.f32 %v719_v23, 0.0  ;;  %v748_v34 = vmax.f32 %v738_v24, 0.0  ;;  %v854_v24 = vpop.permute.xlu1 %853 }
 0x1fe   : > { %v753_v39 = vpack.c.bf16 %v747_v33, %v745_v37  ;;  %v754_v40 = vpack.c.bf16 %v748_v34, %v746_v38 }
 0x201   : > { %v721_v14 = vpop.f32.mrf.mxu0  ;;  %v740_v15 = vpop.f32.mrf.mxu1 }
 0x202   : > { %v722_v18 = vadd.f32 %v721_v14, %v684_v13  ;;  %v741_v19 = vadd.f32 %v740_v15, %v684_v13  ;;  %v864_v15 = vpop.permute.xlu2 %863 }
 0x204   : > { %v749_v29 = vmax.f32 %v722_v18, 0.0  ;;  %v750_v30 = vmax.f32 %v741_v19, 0.0  ;;  %v869_v18 = vpop.permute.xlu0 %868 }
 0x209   : > { %v723_v20 = vpop.f32.mrf.mxu0  ;;  %v742_v21 = vpop.f32.mrf.mxu1 }
 0x20a   : > { %v724_v25 = vadd.f32 %v723_v20, %v689_v16  ;;  %v743_v26 = vadd.f32 %v742_v21, %v689_v16  ;;  %v859_v19 = vpop.permute.xlu2 %858 }
 0x20c   : > { %v751_v31 = vmax.f32 %v724_v25, 0.0  ;;  %v752_v32 = vmax.f32 %v743_v26, 0.0 }
 0x20e   : > { %v755_v35 = vpack.c.bf16 %v751_v31, %v749_v29  ;;  %v756_v36 = vpack.c.bf16 %v752_v32, %v750_v30 }
 0x210   : > { %773 = vmatpush.bf16.msrb.mxu2 %v755_v35  ;;  %786 = vmatpush.bf16.msrb.mxu3 %v756_v36 }
 0x214   : > { %774 = vmatpush.bf16.msrb.mxu2 %v753_v39  ;;  %787 = vmatpush.bf16.msrb.mxu3 %v754_v40 }
 0x217   : > { %2269 = vmatmul.msk.bf16.vlgmr.msrb.gmra.mxu2 %vm604_vm2, %v757_v41  ;;  %2270 = vmatmul.msk.bf16.vlgmr.msrb.gmra.mxu3 %vm604_vm2, %v757_v41 }
 0x218   : > { %809 = vmatpush.bf16.msra.mxu2 %v755_v35  ;;  %822 = vmatpush.bf16.msra.mxu3 %v756_v36 }
 0x21c   : > { %810 = vmatpush.bf16.msra.mxu2 %v753_v39  ;;  %823 = vmatpush.bf16.msra.mxu3 %v754_v40 }
 0x227   : > { %2271 = vmatmul.msk.bf16.vlgmr.msra.gmra.mxu2 %vm604_vm2, %v793_v42  ;;  %2272 = vmatmul.msk.bf16.vlgmr.msra.gmra.mxu3 %vm604_vm2, %v793_v42 }
 0x29a   : > { %v776_v44 = vpop.f32.mrf.mxu2  ;;  %v789_v45 = vpop.f32.mrf.mxu3 }
 0x29b   : > { %v3055_v46 = vadd.f32 %v776_v44, %v762_v43  ;;  %v3057_v47 = vadd.f32 %v789_v45, %v762_v43  ;;  %v2497_v43 = vld [vmem:[%s3359_s4 + $0x20] sm:$0xff]  ;;  %v2498_v44 = vld [vmem:[%s3359_s4 + $0x28] sm:$0xff] }
 0x29d   : > { %v829_v48 = vmul.f32 1.442695, %v3055_v46  ;;  %v831_v49 = vmul.f32 1.442695, %v3057_v47 }
 0x29f   : > { %2568 = vpow2.f32 %v829_v48 }
 0x2a0   : > { %2570 = vpow2.f32 %v831_v49 }
 0x2a2   : > { %v778_v50 = vpop.f32.mrf.mxu2  ;;  %v791_v51 = vpop.f32.mrf.mxu3 }
 0x2a3   : > { %v966_v51 = vpop.permute.xlu0 %965 }
 0x2a5   : > { %v2569_v52 = vpop.eup %2568 }
 0x2a6   : > { %v2571_v53 = vpop.eup %2570  ;;  %v833_v60 = vmul.f32 %v2569_v52, %v460_v54  ;;  %v971_v54 = vpop.permute.xlu1 %970 }
 0x2a7   : > { %v834_v62 = vmul.f32 %v2571_v53, %v461_v55 }
 0x2aa   : > { %v812_v57 = vpop.f32.mrf.mxu2  ;;  %v825_v58 = vpop.f32.mrf.mxu3 }
 0x2ab   : > { %v813_v59 = vadd.f32 %v812_v57, %v798_v56  ;;  %v826_v61 = vadd.f32 %v825_v58, %v798_v56  ;;  %v961_v55 = vpop.permute.xlu0 %960 }
 0x2ad   : > { %v3066_v63 = vadd.f32 %v833_v60, %v813_v59  ;;  %v3068_v0 = vadd.f32 %v834_v62, %v826_v61  ;;  %v956_v60 = vpop.permute.xlu2 %955 }
 0x2af   : > { %v844_v1 = vpack.c.bf16 %v3066_v63, %v3066_v63  ;;  %v845_v2 = vpack.c.bf16 %v3068_v0, %v3068_v0 }
 0x2b1   : > { %v888_v3 = vsel %vm509_vm0, %v844_v1, 0  ;;  %v891_v4 = vsel %vm509_vm0, %v845_v2, 0 }
 0x2b2   : > { %v814_v8 = vpop.f32.mrf.mxu2  ;;  %v827_v9 = vpop.f32.mrf.mxu3  ;;  %900 = vmatpush.bf16.msra.mxu0 %v888_v3  ;;  %919 = vmatpush.bf16.msra.mxu1 %v891_v4 }
 0x2b5   : > { %2289 = vmatmul.msk.bf16.vlgmr.msra.gmra.mxu0 %vm502_vm1, %v2495_v7  ;;  %2291 = vmatmul.msk.bf16.vlgmr.msra.gmra.mxu1 %vm502_vm1, %v2495_v7 }
 0x2c5   : > { %2290 = vmatmul.msk.bf16.gmra.mxu0 %vm502_vm1, %v2496_v10  ;;  %2292 = vmatmul.msk.bf16.gmra.mxu1 %vm502_vm1, %v2496_v10 }
 0x332   : > { %v902_v11 = vpop.f32.mrf.mxu0  ;;  %v921_v12 = vpop.f32.mrf.mxu1 }
 0x333   : > { %v903_v29 = vadd.f32 %v902_v11, %v854_v24  ;;  %v922_v30 = vadd.f32 %v921_v12, %v854_v24 }
 0x335   : > { %v931_v39 = vmax.f32 %v903_v29, 0.0  ;;  %v932_v40 = vmax.f32 %v922_v30, 0.0  ;;  %v1067_v29 = vpop.permute.xlu2 %1066 }
 0x33a   : > { %v904_v13 = vpop.f32.mrf.mxu0  ;;  %v923_v14 = vpop.f32.mrf.mxu1 }
 0x33b   : > { %v905_v25 = vadd.f32 %v904_v13, %v859_v19  ;;  %v924_v26 = vadd.f32 %v923_v14, %v859_v19  ;;  %v2499_v19 = vld [vmem:[%s3359_s4 + $0x30] sm:$0xff] }
 0x33d   : > { %v933_v35 = vmax.f32 %v905_v25, 0.0  ;;  %v934_v36 = vmax.f32 %v924_v26, 0.0  ;;  %v1062_v25 = vpop.permute.xlu1 %1061 }
 0x33f   : > { %v944_v41 = vpack.c.bf16 %v933_v35, %v931_v39  ;;  %v945_v42 = vpack.c.bf16 %v934_v36, %v932_v40 }
 0x342   : > { %v907_v16 = vpop.f32.mrf.mxu0  ;;  %v926_v17 = vpop.f32.mrf.mxu1 }
 0x343   : > { %v908_v20 = vadd.f32 %v907_v16, %v864_v15  ;;  %v927_v21 = vadd.f32 %v926_v17, %v864_v15 }
 0x345   : > { %v935_v31 = vmax.f32 %v908_v20, 0.0  ;;  %v936_v32 = vmax.f32 %v927_v21, 0.0  ;;  %v2500_v20 = vld [vmem:[%s3359_s4 + $0x38] sm:$0xff] }
 0x34a   : > { %v909_v22 = vpop.f32.mrf.mxu0  ;;  %v928_v23 = vpop.f32.mrf.mxu1 }
 0x34b   : > { %v910_v27 = vadd.f32 %v909_v22, %v869_v18  ;;  %v929_v28 = vadd.f32 %v928_v23, %v869_v18 }
 0x34d   : > { %v937_v33 = vmax.f32 %v910_v27, 0.0  ;;  %v938_v34 = vmax.f32 %v929_v28, 0.0  ;;  %v1057_v28 = vpop.permute.xlu1 %1056 }
 0x34f   : > { %v946_v37 = vpack.c.bf16 %v937_v33, %v935_v31  ;;  %v947_v38 = vpack.c.bf16 %v938_v34, %v936_v32  ;;  %v1052_v34 = vpop.permute.xlu0 %1051 }
 0x351   : > { %995 = vmatpush.bf16.msrb.mxu2 %v946_v37  ;;  %1014 = vmatpush.bf16.msrb.mxu3 %v947_v38 }
 0x355   : > { %996 = vmatpush.bf16.msrb.mxu2 %v944_v41  ;;  %1015 = vmatpush.bf16.msrb.mxu3 %v945_v42 }
 0x358   : > { %2309 = vmatmul.msk.bf16.vlgmr.msrb.gmra.mxu2 %vm604_vm2, %v2497_v43  ;;  %2311 = vmatmul.msk.bf16.vlgmr.msrb.gmra.mxu3 %vm604_vm2, %v2497_v43 }
 0x368   : > { %2310 = vmatmul.msk.bf16.gmra.mxu2 %vm604_vm2, %v2498_v44  ;;  %2312 = vmatmul.msk.bf16.gmra.mxu3 %vm604_vm2, %v2498_v44 }
 0x3db   : > { %v998_v45 = vpop.f32.mrf.mxu2  ;;  %v1017_v48 = vpop.f32.mrf.mxu3 }
 0x3dc   : > { %v999_v3 = vadd.f32 %v998_v45, %v956_v60  ;;  %v1018_v4 = vadd.f32 %v1017_v48, %v956_v60 }
 0x3de   : > { %v1027_v15 = vmax.f32 %v999_v3, 0.0  ;;  %v1028_v16 = vmax.f32 %v1018_v4, 0.0 }
 0x3e3   : > { %v1000_v49 = vpop.f32.mrf.mxu2  ;;  %v1019_v50 = vpop.f32.mrf.mxu3 }
 0x3e4   : > { %v1001_v61 = vadd.f32 %v1000_v49, %v961_v55  ;;  %v1020_v62 = vadd.f32 %v1019_v50, %v961_v55  ;;  %v2333_v55 = vld [vmem:[%s3334_s6 + $0x4] sm:$0xf] }
 0x3e6   : > { %v1029_v11 = vmax.f32 %v1001_v61, 0.0  ;;  %v1030_v12 = vmax.f32 %v1020_v62, 0.0 }
 0x3e8   : > { %v1040_v17 = vpack.c.bf16 %v1029_v11, %v1027_v15  ;;  %v1041_v18 = vpack.c.bf16 %v1030_v12, %v1028_v16 }
 0x3eb   : > { %v1003_v52 = vpop.f32.mrf.mxu2  ;;  %v1022_v53 = vpop.f32.mrf.mxu3 }
 0x3ec   : > { %v1004_v56 = vadd.f32 %v1003_v52, %v966_v51  ;;  %v1023_v57 = vadd.f32 %v1022_v53, %v966_v51 }
 0x3ee   : > { %v1031_v7 = vmax.f32 %v1004_v56, 0.0  ;;  %v1032_v8 = vmax.f32 %v1023_v57, 0.0  ;;  %v2337_v56 = vld [vmem:[%s3336_s8 + $0x4] sm:$0xf]  ;;  %v1142_v57 = vpop.permute.xlu2 %1141 }
 0x3f3   : > { %v1005_v58 = vpop.f32.mrf.mxu2  ;;  %v1024_v59 = vpop.f32.mrf.mxu3 }
 0x3f4   : > { %v1006_v1 = vadd.f32 %v1005_v58, %v971_v54  ;;  %v1025_v2 = vadd.f32 %v1024_v59, %v971_v54 }
 0x3f6   : > { %v1033_v9 = vmax.f32 %v1006_v1, 0.0  ;;  %v1034_v10 = vmax.f32 %v1025_v2, 0.0 }
 0x3f8   : > { %v1042_v13 = vpack.c.bf16 %v1033_v9, %v1031_v7  ;;  %v1043_v14 = vpack.c.bf16 %v1034_v10, %v1032_v8  ;;  %v1180_v8 = vpop.permute.xlu0 %1179 }
 0x3fa   : > { %1091 = vmatpush.bf16.msrb.mxu0 %v1042_v13  ;;  %1110 = vmatpush.bf16.msrb.mxu1 %v1043_v14 }
 0x3fe   : > { %1092 = vmatpush.bf16.msrb.mxu0 %v1040_v17  ;;  %1111 = vmatpush.bf16.msrb.mxu1 %v1041_v18 }
 0x401   : > { %2329 = vmatmul.msk.bf16.vlgmr.msrb.gmra.mxu0 %vm604_vm2, %v2499_v19  ;;  %2331 = vmatmul.msk.bf16.vlgmr.msrb.gmra.mxu1 %vm604_vm2, %v2499_v19 }
 0x411   : > { %2330 = vmatmul.msk.bf16.gmra.mxu0 %vm604_vm2, %v2500_v20  ;;  %2332 = vmatmul.msk.bf16.gmra.mxu1 %vm604_vm2, %v2500_v20 }
 0x47e   : > { %v1094_v21 = vpop.f32.mrf.mxu0  ;;  %v1113_v22 = vpop.f32.mrf.mxu1 }
 0x47f   : > { %v1095_v39 = vadd.f32 %v1094_v21, %v1052_v34  ;;  %v1114_v40 = vadd.f32 %v1113_v22, %v1052_v34  ;;  %v2502_v22 = vld [vmem:[%s3357_s2 + $0x28] sm:$0xff] }
 0x481   : > { %v1123_v51 = vmax.f32 %v1095_v39, 0.0  ;;  %v1124_v52 = vmax.f32 %v1114_v40, 0.0 }
 0x486   : > { %v1096_v23 = vpop.f32.mrf.mxu0  ;;  %v1115_v24 = vpop.f32.mrf.mxu1 }
 0x487   : > { %v1097_v35 = vadd.f32 %v1096_v23, %v1057_v28  ;;  %v1116_v36 = vadd.f32 %v1115_v24, %v1057_v28 }
 0x489   : > { %v1125_v45 = vmax.f32 %v1097_v35, 0.0  ;;  %v1126_v48 = vmax.f32 %v1116_v36, 0.0  ;;  %v1236_v36 = vpop.permute.xlu0 %1235 }
 0x48b   : > { %v1131_v53 = vpack.c.bf16 %v1125_v45, %v1123_v51  ;;  %v1132_v54 = vpack.c.bf16 %v1126_v48, %v1124_v52 }
 0x48e   : > { %v1099_v26 = vpop.f32.mrf.mxu0  ;;  %v1118_v27 = vpop.f32.mrf.mxu1 }
 0x48f   : > { %v1100_v30 = vadd.f32 %v1099_v26, %v1062_v25  ;;  %v1119_v31 = vadd.f32 %v1118_v27, %v1062_v25  ;;  %v1246_v27 = vpop.permute.xlu1 %1245 }
 0x491   : > { %v1127_v41 = vmax.f32 %v1100_v30, 0.0  ;;  %v1128_v42 = vmax.f32 %v1119_v31, 0.0  ;;  %v1251_v31 = vpop.permute.xlu2 %1250 }
 0x496   : > { %v1101_v32 = vpop.f32.mrf.mxu0  ;;  %v1120_v33 = vpop.f32.mrf.mxu1 }
 0x497   : > { %v1102_v37 = vadd.f32 %v1101_v32, %v1067_v29  ;;  %v1121_v38 = vadd.f32 %v1120_v33, %v1067_v29  ;;  %v1241_v30 = vpop.permute.xlu1 %1240 }
 0x499   : > { %v1129_v43 = vmax.f32 %v1102_v37, 0.0  ;;  %v1130_v44 = vmax.f32 %v1121_v38, 0.0 }
 0x49b   : > { %v1133_v49 = vpack.c.bf16 %v1129_v43, %v1127_v41  ;;  %v1134_v50 = vpack.c.bf16 %v1130_v44, %v1128_v42 }
 0x49d   : > { %1153 = vmatpush.bf16.msra.mxu2 %v1133_v49  ;;  %1166 = vmatpush.bf16.msra.mxu3 %v1134_v50 }
 0x4a1   : > { %1154 = vmatpush.bf16.msra.mxu2 %v1131_v53  ;;  %1167 = vmatpush.bf16.msra.mxu3 %v1132_v54 }
 0x4a4   : > { %2335 = vmatmul.msk.bf16.vlgmr.msra.gmra.mxu2 %vm604_vm2, %v2333_v55  ;;  %2336 = vmatmul.msk.bf16.vlgmr.msra.gmra.mxu3 %vm604_vm2, %v2333_v55 }
 0x4a5   : > { %1191 = vmatpush.bf16.msrb.mxu2 %v1133_v49  ;;  %1204 = vmatpush.bf16.msrb.mxu3 %v1134_v50 }
 0x4a9   : > { %1192 = vmatpush.bf16.msrb.mxu2 %v1131_v53  ;;  %1205 = vmatpush.bf16.msrb.mxu3 %v1132_v54 }
 0x4b4   : > { %2339 = vmatmul.msk.bf16.vlgmr.msrb.gmra.mxu2 %vm604_vm2, %v2337_v56  ;;  %2340 = vmatmul.msk.bf16.vlgmr.msrb.gmra.mxu3 %vm604_vm2, %v2337_v56 }
 0x527   : > { %v1156_v58 = vpop.f32.mrf.mxu2  ;;  %v1169_v59 = vpop.f32.mrf.mxu3 }
 0x528   : > { %v3116_v60 = vadd.f32 %v1156_v58, %v1142_v57  ;;  %v3118_v61 = vadd.f32 %v1169_v59, %v1142_v57  ;;  %v2503_v57 = vld [vmem:[%s3359_s4 + $0x40] sm:$0xff]  ;;  %v2504_v58 = vld [vmem:[%s3359_s4 + $0x48] sm:$0xff] }
 0x52a   : > { %v1211_v62 = vmul.f32 1.442695, %v3116_v60  ;;  %v1213_v1 = vmul.f32 1.442695, %v3118_v61 }
 0x52c   : > { %2572 = vpow2.f32 %v1211_v62 }
 0x52d   : > { %2574 = vpow2.f32 %v1213_v1 }
 0x52f   : > { %v1158_v2 = vpop.f32.mrf.mxu2  ;;  %v1171_v3 = vpop.f32.mrf.mxu3 }
 0x530   : > { %v1348_v3 = vpop.permute.xlu2 %1347 }
 0x532   : > { %v2573_v4 = vpop.eup %2572 }
 0x533   : > { %v2575_v7 = vpop.eup %2574  ;;  %v1215_v12 = vmul.f32 %v2573_v4, %v2849_v5  ;;  %v2501_v5 = vld [vmem:[%s3357_s2 + $0x20] sm:$0xff] }
 0x534   : > { %v1216_v14 = vmul.f32 %v2575_v7, %v2851_v6 }
 0x537   : > { %v1194_v9 = vpop.f32.mrf.mxu2  ;;  %v1207_v10 = vpop.f32.mrf.mxu3 }
 0x538   : > { %v1195_v11 = vadd.f32 %v1194_v9, %v1180_v8  ;;  %v1208_v13 = vadd.f32 %v1207_v10, %v1180_v8  ;;  %v1353_v8 = vpop.permute.xlu0 %1352  ;;  %v1343_v9 = vpop.permute.xlu2 %1342 }
 0x53a   : > { %v3124_v15 = vadd.f32 %v1215_v12, %v1195_v11  ;;  %v3126_v16 = vadd.f32 %v1216_v14, %v1208_v13  ;;  %v1338_v14 = vpop.permute.xlu1 %1337 }
 0x53c   : > { %v1226_v17 = vpack.c.bf16 %v3124_v15, %v3124_v15  ;;  %v1227_v18 = vpack.c.bf16 %v3126_v16, %v3126_v16 }
 0x53e   : > { %v1270_v19 = vsel %vm509_vm0, %v1226_v17, 0  ;;  %v1273_v20 = vsel %vm509_vm0, %v1227_v18, 0 }
 0x53f   : > { %v1196_v21 = vpop.f32.mrf.mxu2  ;;  %v1209_v6 = vpop.f32.mrf.mxu3  ;;  %1282 = vmatpush.bf16.msra.mxu0 %v1270_v19  ;;  %1301 = vmatpush.bf16.msra.mxu1 %v1273_v20 }
 0x542   : > { %2357 = vmatmul.msk.bf16.vlgmr.msra.gmra.mxu0 %vm502_vm1, %v2501_v5  ;;  %2359 = vmatmul.msk.bf16.vlgmr.msra.gmra.mxu1 %vm502_vm1, %v2501_v5 }
 0x552   : > { %2358 = vmatmul.msk.bf16.gmra.mxu0 %vm502_vm1, %v2502_v22  ;;  %2360 = vmatmul.msk.bf16.gmra.mxu1 %vm502_vm1, %v2502_v22 }
 0x5bf   : > { %v1284_v23 = vpop.f32.mrf.mxu0  ;;  %v1303_v24 = vpop.f32.mrf.mxu1 }
 0x5c0   : > { %v1285_v41 = vadd.f32 %v1284_v23, %v1236_v36  ;;  %v1304_v42 = vadd.f32 %v1303_v24, %v1236_v36 }
 0x5c2   : > { %v1313_v53 = vmax.f32 %v1285_v41, 0.0  ;;  %v1314_v54 = vmax.f32 %v1304_v42, 0.0  ;;  %v1449_v42 = vpop.permute.xlu1 %1448 }
 0x5c7   : > { %v1286_v25 = vpop.f32.mrf.mxu0  ;;  %v1305_v26 = vpop.f32.mrf.mxu1 }
 0x5c8   : > { %v1287_v37 = vadd.f32 %v1286_v25, %v1241_v30  ;;  %v1306_v38 = vadd.f32 %v1305_v26, %v1241_v30 }
 0x5ca   : > { %v1315_v49 = vmax.f32 %v1287_v37, 0.0  ;;  %v1316_v50 = vmax.f32 %v1306_v38, 0.0 }
 0x5cc   : > { %v1326_v55 = vpack.c.bf16 %v1315_v49, %v1313_v53  ;;  %v1327_v56 = vpack.c.bf16 %v1316_v50, %v1314_v54  ;;  %v1434_v50 = vpop.permute.xlu2 %1433 }
 0x5cf   : > { %v1289_v28 = vpop.f32.mrf.mxu0  ;;  %v1308_v29 = vpop.f32.mrf.mxu1 }
 0x5d0   : > { %v1290_v32 = vadd.f32 %v1289_v28, %v1246_v27  ;;  %v1309_v33 = vadd.f32 %v1308_v29, %v1246_v27 }
 0x5d2   : > { %v1317_v43 = vmax.f32 %v1290_v32, 0.0  ;;  %v1318_v44 = vmax.f32 %v1309_v33, 0.0  ;;  %v2505_v33 = vld [vmem:[%s3359_s4 + $0x50] sm:$0xff] }
 0x5d7   : > { %v1291_v34 = vpop.f32.mrf.mxu0  ;;  %v1310_v35 = vpop.f32.mrf.mxu1 }
 0x5d8   : > { %v1292_v39 = vadd.f32 %v1291_v34, %v1251_v31  ;;  %v1311_v40 = vadd.f32 %v1310_v35, %v1251_v31  ;;  %v2506_v34 = vld [vmem:[%s3359_s4 + $0x58] sm:$0xff] }
 0x5da   : > { %v1319_v45 = vmax.f32 %v1292_v39, 0.0  ;;  %v1320_v48 = vmax.f32 %v1311_v40, 0.0  ;;  %v1444_v39 = vpop.permute.xlu0 %1443 }
 0x5dc   : > { %v1328_v51 = vpack.c.bf16 %v1319_v45, %v1317_v43  ;;  %v1329_v52 = vpack.c.bf16 %v1320_v48, %v1318_v44 }
 0x5de   : > { %1377 = vmatpush.bf16.msra.mxu2 %v1328_v51  ;;  %1396 = vmatpush.bf16.msra.mxu3 %v1329_v52 }
 0x5e2   : > { %1378 = vmatpush.bf16.msra.mxu2 %v1326_v55  ;;  %1397 = vmatpush.bf16.msra.mxu3 %v1327_v56  ;;  %v1439_v43 = vpop.permute.xlu0 %1438 }
 0x5e5   : > { %2377 = vmatmul.msk.bf16.vlgmr.msra.gmra.mxu2 %vm604_vm2, %v2503_v57  ;;  %2379 = vmatmul.msk.bf16.vlgmr.msra.gmra.mxu3 %vm604_vm2, %v2503_v57 }
 0x5f5   : > { %2378 = vmatmul.msk.bf16.gmra.mxu2 %vm604_vm2, %v2504_v58  ;;  %2380 = vmatmul.msk.bf16.gmra.mxu3 %vm604_vm2, %v2504_v58 }
 0x668   : > { %v1380_v59 = vpop.f32.mrf.mxu2  ;;  %v1399_v62 = vpop.f32.mrf.mxu3 }
 0x669   : > { %v1381_v5 = vadd.f32 %v1380_v59, %v1338_v14  ;;  %v1400_v21 = vadd.f32 %v1399_v62, %v1338_v14 }
 0x66b   : > { %v1409_v29 = vmax.f32 %v1381_v5, 0.0  ;;  %v1410_v30 = vmax.f32 %v1400_v21, 0.0 }
 0x670   : > { %v1382_v1 = vpop.f32.mrf.mxu2  ;;  %v1401_v2 = vpop.f32.mrf.mxu3 }
 0x671   : > { %v1383_v17 = vadd.f32 %v1382_v1, %v1343_v9  ;;  %v1402_v18 = vadd.f32 %v1401_v2, %v1343_v9 }
 0x673   : > { %v1411_v25 = vmax.f32 %v1383_v17, 0.0  ;;  %v1412_v26 = vmax.f32 %v1402_v18, 0.0  ;;  %v1219_v18 = vadd.f32 %v3116_v60, %v3055_v46 }
 0x675   : > { %v1422_v31 = vpack.c.bf16 %v1411_v25, %v1409_v29  ;;  %v1423_v32 = vpack.c.bf16 %v1412_v26, %v1410_v30  ;;  %v1562_v26 = vpop.permute.xlu2 %1561 }
 0x678   : > { %v1385_v4 = vpop.f32.mrf.mxu2  ;;  %v1404_v7 = vpop.f32.mrf.mxu3 }
 0x679   : > { %v1386_v10 = vadd.f32 %v1385_v4, %v1348_v3  ;;  %v1405_v11 = vadd.f32 %v1404_v7, %v1348_v3 }
 0x67b   : > { %v1413_v6 = vmax.f32 %v1386_v10, 0.0  ;;  %v1414_v22 = vmax.f32 %v1405_v11, 0.0  ;;  %v2401_v11 = vld [vmem:[%s3334_s6 + $0x8] sm:$0xf] }
 0x680   : > { %v1387_v12 = vpop.f32.mrf.mxu2  ;;  %v1406_v13 = vpop.f32.mrf.mxu3 }
 0x681   : > { %v1388_v19 = vadd.f32 %v1387_v12, %v1353_v8  ;;  %v1407_v20 = vadd.f32 %v1406_v13, %v1353_v8  ;;  %v2405_v12 = vld [vmem:[%s3336_s8 + $0x8] sm:$0xf]  ;;  %v1524_v13 = vpop.permute.xlu1 %1523 }
 0x683   : > { %v1415_v23 = vmax.f32 %v1388_v19, 0.0  ;;  %v1416_v24 = vmax.f32 %v1407_v20, 0.0  ;;  %v1220_v19 = vadd.f32 %v3118_v61, %v3057_v47 }
 0x685   : > { %v1424_v27 = vpack.c.bf16 %v1415_v23, %v1413_v6  ;;  %v1425_v28 = vpack.c.bf16 %v1416_v24, %v1414_v22 }
 0x687   : > { %1473 = vmatpush.bf16.msrb.mxu0 %v1424_v27  ;;  %1492 = vmatpush.bf16.msrb.mxu1 %v1425_v28 }
 0x68b   : > { %1474 = vmatpush.bf16.msrb.mxu0 %v1422_v31  ;;  %1493 = vmatpush.bf16.msrb.mxu1 %v1423_v32 }
 0x68e   : > { %2397 = vmatmul.msk.bf16.vlgmr.msrb.gmra.mxu0 %vm604_vm2, %v2505_v33  ;;  %2399 = vmatmul.msk.bf16.vlgmr.msrb.gmra.mxu1 %vm604_vm2, %v2505_v33 }
 0x69e   : > { %2398 = vmatmul.msk.bf16.gmra.mxu0 %vm604_vm2, %v2506_v34  ;;  %2400 = vmatmul.msk.bf16.gmra.mxu1 %vm604_vm2, %v2506_v34 }
 0x70b   : > { %v1476_v35 = vpop.f32.mrf.mxu0  ;;  %v1495_v36 = vpop.f32.mrf.mxu1 }
 0x70c   : > { %v1477_v55 = vadd.f32 %v1476_v35, %v1434_v50  ;;  %v1496_v56 = vadd.f32 %v1495_v36, %v1434_v50  ;;  %v2507_v35 = vld [vmem:[%s3357_s2 + $0x30] sm:$0xff] }
 0x70e   : > { %v1505_v7 = vmax.f32 %v1477_v55, 0.0  ;;  %v1506_v8 = vmax.f32 %v1496_v56, 0.0 }
 0x713   : > { %v1478_v37 = vpop.f32.mrf.mxu0  ;;  %v1497_v38 = vpop.f32.mrf.mxu1 }
 0x714   : > { %v1479_v51 = vadd.f32 %v1478_v37, %v1439_v43  ;;  %v1498_v52 = vadd.f32 %v1497_v38, %v1439_v43  ;;  %v2508_v38 = vld [vmem:[%s3357_s2 + $0x38] sm:$0xff]  ;;  %v1628_v43 = vpop.permute.xlu0 %1627 }
 0x716   : > { %v1507_v1 = vmax.f32 %v1479_v51, 0.0  ;;  %v1508_v2 = vmax.f32 %v1498_v52, 0.0 }
 0x718   : > { %v1513_v9 = vpack.c.bf16 %v1507_v1, %v1505_v7  ;;  %v1514_v10 = vpack.c.bf16 %v1508_v2, %v1506_v8 }
 0x71b   : > { %v1481_v40 = vpop.f32.mrf.mxu0  ;;  %v1500_v41 = vpop.f32.mrf.mxu1 }
 0x71c   : > { %v1482_v44 = vadd.f32 %v1481_v40, %v1444_v39  ;;  %v1501_v45 = vadd.f32 %v1500_v41, %v1444_v39 }
 0x71e   : > { %v1509_v57 = vmax.f32 %v1482_v44, 0.0  ;;  %v1510_v58 = vmax.f32 %v1501_v45, 0.0 }
 0x723   : > { %v1483_v48 = vpop.f32.mrf.mxu0  ;;  %v1502_v49 = vpop.f32.mrf.mxu1 }
 0x724   : > { %v1484_v53 = vadd.f32 %v1483_v48, %v1449_v42  ;;  %v1503_v54 = vadd.f32 %v1502_v49, %v1449_v42  ;;  %v1633_v48 = vpop.permute.xlu1 %1632  ;;  %v1623_v49 = vpop.permute.xlu0 %1622 }
 0x726   : > { %v1511_v59 = vmax.f32 %v1484_v53, 0.0  ;;  %v1512_v62 = vmax.f32 %v1503_v54, 0.0  ;;  %v1618_v54 = vpop.permute.xlu2 %1617 }
 0x728   : > { %v1515_v3 = vpack.c.bf16 %v1511_v59, %v1509_v57  ;;  %v1516_v4 = vpack.c.bf16 %v1512_v62, %v1510_v58 }
 0x72a   : > { %1535 = vmatpush.bf16.msrb.mxu2 %v1515_v3  ;;  %1548 = vmatpush.bf16.msrb.mxu3 %v1516_v4 }
 0x72e   : > { %1536 = vmatpush.bf16.msrb.mxu2 %v1513_v9  ;;  %1549 = vmatpush.bf16.msrb.mxu3 %v1514_v10 }
 0x731   : > { %2403 = vmatmul.msk.bf16.vlgmr.msrb.gmra.mxu2 %vm604_vm2, %v2401_v11  ;;  %2404 = vmatmul.msk.bf16.vlgmr.msrb.gmra.mxu3 %vm604_vm2, %v2401_v11 }
 0x732   : > { %1573 = vmatpush.bf16.msra.mxu2 %v1515_v3  ;;  %1586 = vmatpush.bf16.msra.mxu3 %v1516_v4 }
 0x736   : > { %1574 = vmatpush.bf16.msra.mxu2 %v1513_v9  ;;  %1587 = vmatpush.bf16.msra.mxu3 %v1514_v10 }
 0x741   : > { %2407 = vmatmul.msk.bf16.vlgmr.msra.gmra.mxu2 %vm604_vm2, %v2405_v12  ;;  %2408 = vmatmul.msk.bf16.vlgmr.msra.gmra.mxu3 %vm604_vm2, %v2405_v12 }
 0x7b4   : > { %v1538_v14 = vpop.f32.mrf.mxu2  ;;  %v1551_v17 = vpop.f32.mrf.mxu3 }
 0x7b5   : > { %v1539_v20 = vadd.f32 %v1538_v14, %v1524_v13  ;;  %v1552_v5 = vadd.f32 %v1551_v17, %v1524_v13  ;;  %v2509_v17 = vld [vmem:[%s3359_s4 + $0x60] sm:$0xff] }
 0x7b7   : > { %v1593_v21 = vmul.f32 1.442695, %v1539_v20  ;;  %v3178_v6 = vadd.f32 %v1539_v20, %v1219_v18  ;;  %v3180_v22 = vadd.f32 %v1552_v5, %v1220_v19  ;;  %v1595_v23 = vmul.f32 1.442695, %v1552_v5  ;;  %v2510_v18 = vld [vmem:[%s3359_s4 + $0x68] sm:$0xff] }
 0x7b9   : > { %2576 = vpow2.f32 %v1593_v21 }
 0x7ba   : > { %2578 = vpow2.f32 %v1595_v23  ;;  %v1730_v23 = vpop.permute.xlu1 %1729 }
 0x7bc   : > { %v1540_v24 = vpop.f32.mrf.mxu2  ;;  %v1553_v25 = vpop.f32.mrf.mxu3 }
 0x7bf   : > { %v2577_v46 = vpop.eup %2576 }
 0x7c0   : > { %v2579_v60 = vpop.eup %2578  ;;  %v1597_v28 = vmul.f32 %v2577_v46, %v3066_v63 }
 0x7c1   : > { %v1598_v30 = vmul.f32 %v2579_v60, %v3068_v0  ;;  %v1735_v60 = vpop.permute.xlu2 %1734 }
 0x7c2   : > { %v1725_v46 = vpop.permute.xlu1 %1724 }
 0x7c4   : > { %v1576_v47 = vpop.f32.mrf.mxu2  ;;  %v1589_v61 = vpop.f32.mrf.mxu3 }
 0x7c5   : > { %v1577_v27 = vadd.f32 %v1576_v47, %v1562_v26  ;;  %v1590_v29 = vadd.f32 %v1589_v61, %v1562_v26 }
 0x7c7   : > { %v3188_v31 = vadd.f32 %v1597_v28, %v1577_v27  ;;  %v3190_v32 = vadd.f32 %v1598_v30, %v1590_v29  ;;  %v1720_v28 = vpop.permute.xlu0 %1719 }
 0x7c9   : > { %v1608_v33 = vpack.c.bf16 %v3188_v31, %v3188_v31  ;;  %v1609_v34 = vpack.c.bf16 %v3190_v32, %v3190_v32  ;;  %1987 = vst [vmem:[%s3198_s16] sm:$0xff] %v3188_v31 }
 0x7ca   : > { %1988 = vst [vmem:[%s3198_s16 + $0x8] sm:$0xff] %v3190_v32 }
 0x7cb   : > { %v1652_v63 = vsel %vm509_vm0, %v1608_v33, 0  ;;  %v1655_v0 = vsel %vm509_vm0, %v1609_v34, 0 }
 0x7cc   : > { %v1578_v36 = vpop.f32.mrf.mxu2  ;;  %v1591_v37 = vpop.f32.mrf.mxu3  ;;  %1664 = vmatpush.bf16.msra.mxu0 %v1652_v63  ;;  %1683 = vmatpush.bf16.msra.mxu1 %v1655_v0 }
 0x7cf   : > { %2425 = vmatmul.msk.bf16.vlgmr.msra.gmra.mxu0 %vm502_vm1, %v2507_v35  ;;  %2427 = vmatmul.msk.bf16.vlgmr.msra.gmra.mxu1 %vm502_vm1, %v2507_v35 }
 0x7df   : > { %2426 = vmatmul.msk.bf16.gmra.mxu0 %vm502_vm1, %v2508_v38  ;;  %2428 = vmatmul.msk.bf16.gmra.mxu1 %vm502_vm1, %v2508_v38 }
 0x84c   : > { %v1666_v39 = vpop.f32.mrf.mxu0  ;;  %v1685_v40 = vpop.f32.mrf.mxu1 }
 0x84d   : > { %v1667_v59 = vadd.f32 %v1666_v39, %v1618_v54  ;;  %v1686_v62 = vadd.f32 %v1685_v40, %v1618_v54 }
 0x84f   : > { %v1695_v11 = vmax.f32 %v1667_v59, 0.0  ;;  %v1696_v12 = vmax.f32 %v1686_v62, 0.0 }
 0x854   : > { %v1668_v41 = vpop.f32.mrf.mxu0  ;;  %v1687_v42 = vpop.f32.mrf.mxu1 }
 0x855   : > { %v1669_v55 = vadd.f32 %v1668_v41, %v1623_v49  ;;  %v1688_v56 = vadd.f32 %v1687_v42, %v1623_v49  ;;  %v2511_v49 = vld [vmem:[%s3359_s4 + $0x70] sm:$0xff] }
 0x857   : > { %v1697_v7 = vmax.f32 %v1669_v55, 0.0  ;;  %v1698_v8 = vmax.f32 %v1688_v56, 0.0  ;;  %v1826_v55 = vpop.permute.xlu2 %1825 }
 0x859   : > { %v1708_v13 = vpack.c.bf16 %v1697_v7, %v1695_v11  ;;  %v1709_v14 = vpack.c.bf16 %v1698_v8, %v1696_v12 }
 0x85c   : > { %v1671_v44 = vpop.f32.mrf.mxu0  ;;  %v1690_v45 = vpop.f32.mrf.mxu1 }
 0x85d   : > { %v1672_v50 = vadd.f32 %v1671_v44, %v1628_v43  ;;  %v1691_v51 = vadd.f32 %v1690_v45, %v1628_v43 }
 0x85f   : > { %v1699_v1 = vmax.f32 %v1672_v50, 0.0  ;;  %v1700_v2 = vmax.f32 %v1691_v51, 0.0  ;;  %v2512_v50 = vld [vmem:[%s3359_s4 + $0x78] sm:$0xff]  ;;  %v1821_v59 = vpop.permute.xlu2 %1820  ;;  %s2604_s4 = scalar_lea.hbm %s3339_s11, 32 }
 0x860   : > { %p2606_p1 = scmp.lt.s32.totalorder %s2604_s4, %s2600_s30 }
 0x862   : > { %p2607_p2 = por %p2606_p1, %p2605_p0 }
 0x864   : > { %v1673_v52 = vpop.f32.mrf.mxu0  ;;  %v1692_v53 = vpop.f32.mrf.mxu1  ;;  %p2608_p3 = pnand %p2607_p2, %p2603_p13 }
 0x865   : > { %v1674_v57 = vadd.f32 %v1673_v52, %v1633_v48  ;;  %v1693_v58 = vadd.f32 %v1692_v53, %v1633_v48 }
 0x867   : > { %v1701_v3 = vmax.f32 %v1674_v57, 0.0  ;;  %v1702_v4 = vmax.f32 %v1693_v58, 0.0  ;;  %v1831_v58 = vpop.permute.xlu0 %1830 }
 0x869   : > { %v1710_v9 = vpack.c.bf16 %v1701_v3, %v1699_v1  ;;  %v1711_v10 = vpack.c.bf16 %v1702_v4, %v1700_v2  ;;  %v1816_v4 = vpop.permute.xlu1 %1815 }
 0x86b   : > { %1759 = vmatpush.bf16.msrb.mxu2 %v1710_v9  ;;  %1778 = vmatpush.bf16.msrb.mxu3 %v1711_v10 }
 0x86f   : > { %1760 = vmatpush.bf16.msrb.mxu2 %v1708_v13  ;;  %1779 = vmatpush.bf16.msrb.mxu3 %v1709_v14 }
 0x872   : > { %2445 = vmatmul.msk.bf16.vlgmr.msrb.gmra.mxu2 %vm604_vm2, %v2509_v17  ;;  %2447 = vmatmul.msk.bf16.vlgmr.msrb.gmra.mxu3 %vm604_vm2, %v2509_v17 }
 0x882   : > { %2446 = vmatmul.msk.bf16.gmra.mxu2 %vm604_vm2, %v2510_v18  ;;  %2448 = vmatmul.msk.bf16.gmra.mxu3 %vm604_vm2, %v2510_v18 }
 0x8f5   : > { %v1762_v19 = vpop.f32.mrf.mxu2  ;;  %v1781_v20 = vpop.f32.mrf.mxu3 }
 0x8f6   : > { %v1763_v63 = vadd.f32 %v1762_v19, %v1720_v28  ;;  %v1782_v0 = vadd.f32 %v1781_v20, %v1720_v28 }
 0x8f8   : > { %v1791_v43 = vmax.f32 %v1763_v63, 0.0  ;;  %v1792_v44 = vmax.f32 %v1782_v0, 0.0 }
 0x8fd   : > { %v1764_v5 = vpop.f32.mrf.mxu2  ;;  %v1783_v21 = vpop.f32.mrf.mxu3 }
 0x8fe   : > { %v1765_v29 = vadd.f32 %v1764_v5, %v1725_v46  ;;  %v1784_v30 = vadd.f32 %v1783_v21, %v1725_v46 }
 0x900   : > { %v1793_v39 = vmax.f32 %v1765_v29, 0.0  ;;  %v1794_v40 = vmax.f32 %v1784_v30, 0.0 }
 0x902   : > { %v1804_v45 = vpack.c.bf16 %v1793_v39, %v1791_v43  ;;  %v1805_v48 = vpack.c.bf16 %v1794_v40, %v1792_v44 }
 0x905   : > { %v1767_v24 = vpop.f32.mrf.mxu2  ;;  %v1786_v25 = vpop.f32.mrf.mxu3 }
 0x906   : > { %v1768_v26 = vadd.f32 %v1767_v24, %v1730_v23  ;;  %v1787_v47 = vadd.f32 %v1786_v25, %v1730_v23 }
 0x908   : > { %v1795_v35 = vmax.f32 %v1768_v26, 0.0  ;;  %v1796_v36 = vmax.f32 %v1787_v47, 0.0  ;;  %v2473_v26 = vld [vmem:[%s3336_s8 + $0xc] sm:$0xf] }
 0x90d   : > { %v1769_v61 = vpop.f32.mrf.mxu2  ;;  %v1788_v27 = vpop.f32.mrf.mxu3 }
 0x90e   : > { %v1770_v33 = vadd.f32 %v1769_v61, %v1735_v60  ;;  %v1789_v34 = vadd.f32 %v1788_v27, %v1735_v60  ;;  %v2469_v60 = vld [vmem:[%s3334_s6 + $0xc] sm:$0xf] }
 0x910   : > { %v1797_v37 = vmax.f32 %v1770_v33, 0.0  ;;  %v1798_v38 = vmax.f32 %v1789_v34, 0.0 }
 0x912   : > { %v1806_v41 = vpack.c.bf16 %v1797_v37, %v1795_v35  ;;  %v1807_v42 = vpack.c.bf16 %v1798_v38, %v1796_v36 }
 0x914   : > { %1855 = vmatpush.bf16.msrb.mxu0 %v1806_v41  ;;  %1874 = vmatpush.bf16.msrb.mxu1 %v1807_v42 }
 0x918   : > { %1856 = vmatpush.bf16.msrb.mxu0 %v1804_v45  ;;  %1875 = vmatpush.bf16.msrb.mxu1 %v1805_v48 }
 0x91b   : > { %2465 = vmatmul.msk.bf16.vlgmr.msrb.gmra.mxu0 %vm604_vm2, %v2511_v49  ;;  %2467 = vmatmul.msk.bf16.vlgmr.msrb.gmra.mxu1 %vm604_vm2, %v2511_v49 }
 0x92b   : > { %2466 = vmatmul.msk.bf16.gmra.mxu0 %vm604_vm2, %v2512_v50  ;;  %2468 = vmatmul.msk.bf16.gmra.mxu1 %vm604_vm2, %v2512_v50 }
 0x998   : > { %v1858_v51 = vpop.f32.mrf.mxu0  ;;  %v1877_v52 = vpop.f32.mrf.mxu1 }
 0x999   : > { %v1859_v11 = vadd.f32 %v1858_v51, %v1816_v4  ;;  %v1878_v12 = vadd.f32 %v1877_v52, %v1816_v4 }
 0x99b   : > { %v1887_v23 = vmax.f32 %v1859_v11, 0.0  ;;  %v1888_v24 = vmax.f32 %v1878_v12, 0.0 }
 0x9a0   : > { %v1860_v53 = vpop.f32.mrf.mxu0  ;;  %v1879_v54 = vpop.f32.mrf.mxu1 }
 0x9a1   : > { %v1861_v7 = vadd.f32 %v1860_v53, %v1821_v59  ;;  %v1880_v8 = vadd.f32 %v1879_v54, %v1821_v59 }
 0x9a3   : > { %v1889_v19 = vmax.f32 %v1861_v7, 0.0  ;;  %v1890_v20 = vmax.f32 %v1880_v8, 0.0 }
 0x9a5   : > { %v1895_v25 = vpack.c.bf16 %v1889_v19, %v1887_v23  ;;  %v1896_v46 = vpack.c.bf16 %v1890_v20, %v1888_v24 }
 0x9a8   : > { %v1863_v56 = vpop.f32.mrf.mxu0  ;;  %v1882_v57 = vpop.f32.mrf.mxu1 }
 0x9a9   : > { %v1864_v62 = vadd.f32 %v1863_v56, %v1826_v55  ;;  %v1883_v1 = vadd.f32 %v1882_v57, %v1826_v55 }
 0x9ab   : > { %v1891_v13 = vmax.f32 %v1864_v62, 0.0  ;;  %v1892_v14 = vmax.f32 %v1883_v1, 0.0 }
 0x9b0   : > { %v1865_v2 = vpop.f32.mrf.mxu0  ;;  %v1884_v3 = vpop.f32.mrf.mxu1 }
 0x9b1   : > { %v1866_v9 = vadd.f32 %v1865_v2, %v1831_v58  ;;  %v1885_v10 = vadd.f32 %v1884_v3, %v1831_v58 }
 0x9b3   : > { %v1893_v17 = vmax.f32 %v1866_v9, 0.0  ;;  %v1894_v18 = vmax.f32 %v1885_v10, 0.0 }
 0x9b5   : > { %v1897_v5 = vpack.c.bf16 %v1893_v17, %v1891_v13  ;;  %v1898_v21 = vpack.c.bf16 %v1894_v18, %v1892_v14 }
 0x9b7   : > { %1917 = vmatpush.bf16.msra.mxu2 %v1897_v5  ;;  %1930 = vmatpush.bf16.msra.mxu3 %v1898_v21 }
 0x9bb   : > { %1918 = vmatpush.bf16.msra.mxu2 %v1895_v25  ;;  %1931 = vmatpush.bf16.msra.mxu3 %v1896_v46 }
 0x9be   : > { %2471 = vmatmul.msk.bf16.vlgmr.msra.gmra.mxu2 %vm604_vm2, %v2469_v60  ;;  %2472 = vmatmul.msk.bf16.vlgmr.msra.gmra.mxu3 %vm604_vm2, %v2469_v60 }
 0x9bf   : > { %1955 = vmatpush.bf16.msrb.mxu2 %v1897_v5  ;;  %1968 = vmatpush.bf16.msrb.mxu3 %v1898_v21 }
 0x9c3   : > { %1956 = vmatpush.bf16.msrb.mxu2 %v1895_v25  ;;  %1969 = vmatpush.bf16.msrb.mxu3 %v1896_v46 }
 0x9ce   : > { %2475 = vmatmul.msk.bf16.vlgmr.msrb.gmra.mxu2 %vm604_vm2, %v2473_v26  ;;  %2476 = vmatmul.msk.bf16.vlgmr.msrb.gmra.mxu3 %vm604_vm2, %v2473_v26 }
 0x9cf   : > { %2611 = shalt.err (!%p2608_p3)
}
 0x9d0   : > { %2516 = dma.vmem_to_hbm [thread:$0]  (%p2814_p5), %s2064_s29, 256, %s2066_s20, %s3254_s1   ;;  %v1906_v47 = vpop.permute.xlu0 %1905  ;;  %v1944_v36 = vpop.permute.xlu1 %1943  ;;  %v1991_v45 = vmul.f32 %v3188_v31, %v3188_v31  ;;  %v1992_v48 = vmul.f32 %v3190_v32, %v3190_v32 }
 0x9d1   : > { %s2046_s4 = scalar_lea.hbm %s3338_s10, %s2513_s28  ;;  %s3362_s5 = sshll.u32 %s3183_s15, 4 }
 0x9d2   : > { %s427_s20 = scalar_lea.vmem [#allocation2], %s3362_s5  ;;  %s2050_s17 = sshll.u32 %s2046_s4, 4  ;;  %s2051_s17 = int_to_ptr.hbm [resolvable:$true] %s2050_s17 }
 0x9d3   : > { %s2048_s16 = sshll.u32 %s427_s20, 4  ;;  %s2025_s25 = scalar_lea.sflag [#allocation3], %s3183_s15  ;;  %s2049_s16 = int_to_ptr.vmem [resolvable:$true] %s2048_s16 }
 0x9d4   : > { %s2626_s28 = sshra.s32 %s2051_s17, 4  ;;  %s2632_s26 = scalar_lea.hbm %s3338_s10, 32  ;;  %s2627_s28 = int_to_ptr.hbm [resolvable:$true] %s2626_s28 }
 0x9d5   : > { %s2628_s0 = scalar_lea.hbm %s2627_s28, 16  ;;  %p2633_p9 = scmp.lt.s32.totalorder %s2627_s28, %s3338_s10 }
 0x9d6   : > { %p2629_p4 = scmp.ne.s32.totalorder %s2627_s28, %s2628_s0  ;;  %p2634_p10 = scmp.lt.s32.totalorder %s2632_s26, %s2628_s0 }
 0x9d8   : > { %p2630_p7 = pnand %p2629_p4, %p2814_p5  ;;  %p2635_p11 = por %p2634_p10, %p2633_p9 }
 0x9da   : > { %p2631_p8 = pneg %p2630_p7 }
 0x9dc   : > { %p2636_p12 = pnand %p2635_p11, %p2631_p8 }
 0xa41   : > { %v1920_v61 = vpop.f32.mrf.mxu2  ;;  %v1933_v27 = vpop.f32.mrf.mxu3 }
 0xa42   : > { %v1921_v28 = vadd.f32 %v1920_v61, %v1906_v47  ;;  %v1934_v29 = vadd.f32 %v1933_v27, %v1906_v47 }
 0xa44   : > { %v1975_v30 = vmul.f32 1.442695, %v1921_v28  ;;  %v1977_v33 = vmul.f32 1.442695, %v1934_v29 }
 0xa46   : > { %2580 = vpow2.f32 %v1975_v30 }
 0xa47   : > { %2582 = vpow2.f32 %v1977_v33 }
 0xa49   : > { %v1922_v34 = vpop.f32.mrf.mxu2  ;;  %v1935_v63 = vpop.f32.mrf.mxu3 }
 0xa4c   : > { %v2581_v0 = vpop.eup %2580 }
 0xa4d   : > { %v2583_v35 = vpop.eup %2582  ;;  %v1979_v40 = vmul.f32 %v2581_v0, %v3124_v15 }
 0xa4e   : > { %v1980_v42 = vmul.f32 %v2583_v35, %v3126_v16 }
 0xa51   : > { %v1958_v37 = vpop.f32.mrf.mxu2  ;;  %v1971_v38 = vpop.f32.mrf.mxu3 }
 0xa52   : > { %v1959_v39 = vadd.f32 %v1958_v37, %v1944_v36  ;;  %v1972_v41 = vadd.f32 %v1971_v38, %v1944_v36 }
 0xa54   : > { %v1981_v43 = vadd.f32 %v1979_v40, %v1959_v39  ;;  %v1982_v44 = vadd.f32 %v1980_v42, %v1972_v41 }
 0xa56   : > { %1985 = vst [vmem:[%s427_s20] sm:$0xff] %v1981_v43  ;;  %v1989_v15 = vmul.f32 %v1981_v43, %v1981_v43  ;;  %v1990_v49 = vmul.f32 %v1982_v44, %v1982_v44 }
 0xa57   : > { %1986 = vst [vmem:[%s427_s20 + $0x8] sm:$0xff] %v1982_v44 }
 0xa58   : > { %v1993_v16 = vadd.f32 %v1991_v45, %v1989_v15  ;;  %v1994_v50 = vadd.f32 %v1992_v48, %v1990_v49 }
 0xa59   : > { %2639 = shalt.err (!%p2636_p12)
}
 0xa5a   : > { %2515 = dma.vmem_to_hbm [thread:$0]  (%p2814_p5), %s2049_s16, 256, %s2051_s17, %s2025_s25   ;;  %v1973_v31 = vpop.f32.mrf.mxu3  ;;  %v1960_v32 = vpop.f32.mrf.mxu2  ;;  %v1983_v51 = vadd.f32 %v1921_v28, %v3178_v6  ;;  %v1984_v52 = vadd.f32 %v1934_v29, %v3180_v22  ;;  %v1995_v53 = vmul.f32 0.5, %v1993_v16  ;;  %v1996_v54 = vmul.f32 0.5, %v1994_v50 }
 0xa5b   : > { %s2220_s2 = sshll.u32 %s3183_s15, 1  ;;  %s2075_s5 = scalar_lea.hbm %s3340_s12, %s2831_s19  ;;  %v2019_v9 = vlaneseq  ;;  %vm2016_vm3 = vcmask 1040384  }
 0xa5c   : > { %v1997_v55 = vsub.f32 %v1983_v51, %v1995_v53  ;;  %v1998_v56 = vsub.f32 %v1984_v52, %v1996_v54  ;;  %s441_s20 = scalar_lea.vmem [#allocation6], %s2220_s2  ;;  %s2079_s17 = sshll.u32 %s2075_s5, 4  ;;  %s2080_s17 = int_to_ptr.hbm [resolvable:$true] %s2079_s17 }
 0xa5d   : > { %s2077_s16 = sshll.u32 %s441_s20, 4  ;;  %vm2021_vm4 = vcmp.lt.s32.totalorder %v2019_v9, 256  ;;  %s2654_s15 = sshra.s32 %s2080_s17, 4  ;;  %s2078_s16 = int_to_ptr.vmem [resolvable:$true] %s2077_s16  ;;  %s2655_s15 = int_to_ptr.hbm [resolvable:$true] %s2654_s15 }
 0xa5e   : > { %v1999_v57 = vrot.slane %v1997_v55, 4  ;;  %v2005_v58 = vrot.slane %v1998_v56, 4  ;;  %s2656_s25 = scalar_lea.hbm %s2655_s15, 2  ;;  %s2660_s0 = scalar_lea.hbm %s3340_s12, 4 }
 0xa5f   : > { %p2657_p13 = scmp.ne.s32.totalorder %s2655_s15, %s2656_s25  ;;  %p2661_p2 = scmp.lt.s32.totalorder %s2655_s15, %s3340_s12 }
 0xa60   : > { %v2000_v59 = vadd.f32 %v1999_v57, %v1997_v55  ;;  %v2006_v62 = vadd.f32 %v2005_v58, %v1998_v56  ;;  %p2662_p3 = scmp.lt.s32.totalorder %s2660_s0, %s2656_s25 }
 0xa61   : > { %p2658_p0 = pnand %p2657_p13, %p2814_p5 }
 0xa62   : > { %v2001_v1 = vrot.slane %v2000_v59, 2  ;;  %v2007_v2 = vrot.slane %v2006_v62, 2  ;;  %p2663_p4 = por %p2662_p3, %p2661_p2 }
 0xa63   : > { %p2659_p1 = pneg %p2658_p0 }
 0xa64   : > { %v2002_v3 = vadd.f32 %v2001_v1, %v2000_v59  ;;  %v2008_v4 = vadd.f32 %v2007_v2, %v2006_v62 }
 0xa65   : > { %p2664_p7 = pnand %p2663_p4, %p2659_p1 }
 0xa66   : > { %v2009_v7 = vrot.slane %v2008_v4, 1  ;;  %v2003_v8 = vrot.slane %v2002_v3, 1 }
 0xa68   : > { %v2004_v6 = vadd.f32 %v2003_v8, %v2002_v3  ;;  %v2010_v22 = vadd.f32 %v2009_v7, %v2008_v4 }
 0xa6a   : > { %v2478_v10 = vadd.f32 -14.703016, %v2010_v22  ;;  %v2477_v11 = vadd.f32 -14.703016, %v2004_v6 }
 0xa6c   : > { %v2015_v12 = vrot.slane %v2478_v10, 7 }
 0xa6e   : > { %v2017_v13 = vsel %vm2016_vm3, %v2477_v11, %v2015_v12 }
 0xa6f   : > { %2023 = vst.msk [vmem:[%s441_s20] sm:$0x3] %vm2021_vm4, %v2017_v13 }
 0xa70   : > { %2667 = shalt.err (!%p2664_p7)
}
 0xa71   : > { %2517 = dma.vmem_to_hbm [thread:$0]  (%p2814_p5), %s2078_s16, 32, %s2080_s17, %s3254_s1  }
 0xa72 PF: > { %p2531_p8 = scmp.ge.s32.totalorder %s2706_s24, 2  ;;  %s2091_s26 = sand.u32 1, %s2694_s21  }
 0xa73   : > { %s2092_s30 = scalar_lea.sflag [#allocation3], %s2091_s26 }
 0xa74   : > { %p2522_p9 = pnand %p2531_p8, %p2818_p6 }
 0xa76   : > { %p2523_p10 = pneg %p2522_p9 }
 0xa78   : > { %2685 = dma.done.wait (%p2523_p10), %s2092_s30, 256  }
 0xa79   : > { %2687 = vsyncadd (%p2523_p10), %s2092_s30, 4294967040  ;;  %s3363_s18 = sadd.s32 4294967294, %s2706_s24  }
 0xa7a   : > { %s2101_s2 = sand.u32 1, %s3363_s18  }
 0xa7b   : > { %s2102_s3 = scalar_lea.sflag [#allocation5], %s2101_s2 }
 0xa7c   : > { %2689 = dma.done.wait (%p2523_p10), %s2102_s3, 288  }
 0xa7d   : > { %2691 = vsyncadd (%p2523_p10), %s2102_s3, 4294967008  ;;  %s3364_s1 = sld [smem:[#allocation9_spill]]  ;;  %p26_p5 = scmp.ge.s32.totalorder %s2799_s27, 4  }
 0xa7e   : > { %s3365_s23 = sld [smem:[#allocation10_spill]]  ;;  %s3366_s21 = smov %s2698_s22 }
 0xa7f   : > { %s3368_s24 = smov %s2799_s27  ;;  %28 = sbr.rel (!%p26_p5) target bundleno = 12 (0xc), region = 162 }
 0xa83   : > { %s3367_s22 = smov %s3364_s1 }
 0xa84   :  { %2118 = vsyncpa [#allocation3], 1 }
 0xa85   :  { %2120 = vsyncpa [#allocation3 + $0x1], 1 }
 0xa86   :  { %2121 = vsyncpa [#allocation5], 1 }
 0xa87   :  { %2123 = vsyncpa [#allocation5 + $0x1], 1 }

</bundles_post_ra>
